<compile_context>
chip_gen: v7x
topology: tpu7x:2x2x1
jax: 0.10.0
libtpu: 0.0.40
codegen_flags: <defaults>
</compile_context>

<pallas_src>
import jax
import jax.numpy as jnp
from jax.experimental import pallas as pl
from jax.experimental.pallas import tpu as pltpu

HIDDEN = 768          # BERT hidden / pooler width
FC1 = 512
NUM_CLASSES = 2
PAD_CLASSES = 128     # lane-dense padded class width (128 lanes)


def _round_up(x, m):
    return (x + m - 1) // m * m


def fused_head_kernel(pooled_ref, wp_ref, bp_ref, w1_ref, b1_ref, w2_ref, b2_ref, o_ref):
    """pooler(tanh) -> fc1 -> ReLU -> (dropout: identity) -> fc2 -> LogSoftmax."""
    x = pooled_ref[...]                                           # [TM, 768] bf16

    # BERT pooler projection: tanh(pooled @ W_pool + b_pool); f32 accumulation.
    hp = jnp.dot(x, wp_ref[...], preferred_element_type=jnp.float32) + bp_ref[...]
    cls_hs = jnp.tanh(hp)                                         # f32 (EUP)

    # fc1 + ReLU (nn.Dropout(0.1) is identity at inference).
    h = jnp.dot(cls_hs.astype(jnp.bfloat16), w1_ref[...],
                preferred_element_type=jnp.float32) + b1_ref[...]
    h = jnp.maximum(h, 0.0)

    # fc2 into a lane-dense [TM, 128] padded class layout.
    logits = jnp.dot(h.astype(jnp.bfloat16), w2_ref[...],
                     preferred_element_type=jnp.float32) + b2_ref[...]

    # Mask padded class lanes to -inf so they cannot corrupt the normalizer.
    lane = jax.lax.broadcasted_iota(jnp.int32, logits.shape, 1)
    logits = jnp.where(lane < NUM_CLASSES, logits, -jnp.inf)

    # Numerically stable LogSoftmax over the class axis (f32; exp/log on EUP).
    m = jnp.max(logits, axis=1, keepdims=True)
    z = logits - m
    lse = jnp.log(jnp.sum(jnp.exp(z), axis=1, keepdims=True))
    o_ref[...] = (z - lse).astype(o_ref.dtype)


def bert_arch_head(pooled, w_pool, b_pool, w1, b1, w2, b2, *, tm=256):
    """Fused Pallas head. pooled: [B, 768] f32 -> log-probs [B, 2] f32."""
    B = pooled.shape[0]
    TM = min(tm, _round_up(B, 8))           # sublane-aligned batch tile
    Bp = _round_up(B, TM)
    if Bp != B:
        pooled = jnp.pad(pooled, ((0, Bp - B), (0, 0)))

    # bf16 MXU operands (f32 accumulation in-kernel); biases stay f32.
    pooled_bf = pooled.astype(jnp.bfloat16)
    wp_bf = w_pool.astype(jnp.bfloat16)
    w1_bf = w1.astype(jnp.bfloat16)
    w2_pad = jnp.zeros((FC1, PAD_CLASSES), jnp.bfloat16).at[:, :NUM_CLASSES].set(
        w2.astype(jnp.bfloat16))
    b2_pad = jnp.zeros((1, PAD_CLASSES), jnp.float32).at[:, :NUM_CLASSES].set(
        b2.astype(jnp.float32))
    bp2 = b_pool.reshape(1, HIDDEN).astype(jnp.float32)
    b1_2 = b1.reshape(1, FC1).astype(jnp.float32)

    grid = (Bp // TM,)
    const = lambda i: (0, 0)                # weights/biases resident across batch tiles

    flops = 2 * Bp * (HIDDEN * HIDDEN + HIDDEN * FC1 + FC1 * PAD_CLASSES)
    transcendentals = Bp * (HIDDEN + PAD_CLASSES)        # tanh + exp
    bytes_accessed = (pooled_bf.size * 2 + wp_bf.size * 2 + w1_bf.size * 2
                      + w2_pad.size * 2
                      + (bp2.size + b1_2.size + b2_pad.size) * 4
                      + Bp * PAD_CLASSES * 4)

    out_pad = pl.pallas_call(
        fused_head_kernel,
        out_shape=jax.ShapeDtypeStruct((Bp, PAD_CLASSES), jnp.float32),
        grid=grid,
        in_specs=[
            pl.BlockSpec((TM, HIDDEN), lambda i: (i, 0)),       # pooled batch tile
            pl.BlockSpec((HIDDEN, HIDDEN), const),              # w_pool
            pl.BlockSpec((1, HIDDEN), const),                   # b_pool
            pl.BlockSpec((HIDDEN, FC1), const),                 # w1
            pl.BlockSpec((1, FC1), const),                      # b1
            pl.BlockSpec((FC1, PAD_CLASSES), const),            # w2 (lane-padded)
            pl.BlockSpec((1, PAD_CLASSES), const),              # b2 (lane-padded)
        ],
        out_specs=pl.BlockSpec((TM, PAD_CLASSES), lambda i: (i, 0)),
        compiler_params=pltpu.CompilerParams(
            dimension_semantics=("parallel",)),
        cost_estimate=pl.CostEstimate(
            flops=flops, transcendentals=transcendentals,
            bytes_accessed=bytes_accessed),
    )(pooled_bf, wp_bf, bp2, w1_bf, b1_2, w2_pad, b2_pad)

    return out_pad[:B, :NUM_CLASSES]


def synthetic_bert_pooled_mean(sent_id, mask, emb_table):
    """Deterministic stand-in for the BERT encoder: embedding + masked mean.

    The dense pooler projection + tanh is fused into the Pallas kernel, so this
    only produces the pre-projection pooled vector [B, 768].
    """
    emb = emb_table[sent_id]                                   # [B, S, 768]
    m = mask.astype(jnp.float32)[..., None]                    # [B, S, 1]
    return (emb * m).sum(axis=1) / jnp.maximum(m.sum(axis=1), 1.0)


if __name__ == "__main__":
    key = jax.random.PRNGKey(0)
    k_ids, k_emb, k_wp, k_bp, k_w1, k_b1, k_w2, k_b2 = jax.random.split(key, 8)

    B, SEQ, VOCAB = 2, 8, 100
    sent_id = jax.random.randint(k_ids, (B, SEQ), 0, VOCAB, dtype=jnp.int32)
    mask = jnp.ones((B, SEQ), dtype=jnp.int32)

    # Deterministic synthetic parameters (shapes taken from __init__).
    emb_table = 0.02 * jax.random.normal(k_emb, (VOCAB, HIDDEN), jnp.float32)
    w_pool = 0.02 * jax.random.normal(k_wp, (HIDDEN, HIDDEN), jnp.float32)
    b_pool = 0.02 * jax.random.normal(k_bp, (HIDDEN,), jnp.float32)
    w1 = 0.02 * jax.random.normal(k_w1, (HIDDEN, FC1), jnp.float32)       # fc1: 768 -> 512
    b1 = 0.02 * jax.random.normal(k_b1, (FC1,), jnp.float32)
    w2 = 0.02 * jax.random.normal(k_w2, (FC1, NUM_CLASSES), jnp.float32)  # fc2: 512 -> 2
    b2 = 0.02 * jax.random.normal(k_b2, (NUM_CLASSES,), jnp.float32)

    # "self.bert(...)" stand-in up to (but not including) the pooler projection.
    pooled = synthetic_bert_pooled_mean(sent_id, mask, emb_table)

    # Pallas fused pooler + classification head.
    log_probs = jax.block_until_ready(
        bert_arch_head(pooled, w_pool, b_pool, w1, b1, w2, b2))

    # Pure-f32 JAX reference of the exact fused path (bf16 MXU -> looser tol).
    cls_hs = jnp.tanh(pooled @ w_pool + b_pool)
    h = jnp.maximum(cls_hs @ w1 + b1, 0.0)
    ref = jax.nn.log_softmax(h @ w2 + b2, axis=1)

    assert log_probs.shape == (B, NUM_CLASSES)
    assert jnp.allclose(log_probs, ref, atol=2e-2, rtol=2e-2)
    # Log-softmax is computed in f32 in-kernel, so normalization is exact-ish.
    assert jnp.allclose(jnp.exp(log_probs).sum(axis=1), 1.0, atol=1e-5)

    print("KERNEL_OK")
</pallas_src>

<mosaic_0001>
module attributes {stable_mosaic.version = 11 : i64} {
  func.func @fused_head_kernel(%arg0: i32, %arg1: memref<8x768xbf16, #tpu.memory_space<vmem>>, %arg2: memref<768x768xbf16, #tpu.memory_space<vmem>>, %arg3: memref<1x768xf32, #tpu.memory_space<vmem>>, %arg4: memref<768x512xbf16, #tpu.memory_space<vmem>>, %arg5: memref<1x512xf32, #tpu.memory_space<vmem>>, %arg6: memref<512x128xbf16, #tpu.memory_space<vmem>>, %arg7: memref<1x128xf32, #tpu.memory_space<vmem>>, %arg8: memref<8x128xf32, #tpu.memory_space<vmem>>) attributes {dimension_semantics = [#tpu.dimension_semantics<parallel>], iteration_bounds = array<i64: 1>, scalar_prefetch = 0 : i64, scratch_operands = 0 : i64, tpu.core_type = #tpu.core_type<tc>, window_params = [{transform_indices = @transform_0, window_bounds = array<i64: 8, 768>}, {pipeline_mode = #tpu.pipeline_mode<synchronous>, transform_indices = @transform_1, window_bounds = array<i64: 768, 768>}, {pipeline_mode = #tpu.pipeline_mode<synchronous>, transform_indices = @transform_2, window_bounds = array<i64: 1, 768>}, {pipeline_mode = #tpu.pipeline_mode<synchronous>, transform_indices = @transform_3, window_bounds = array<i64: 768, 512>}, {pipeline_mode = #tpu.pipeline_mode<synchronous>, transform_indices = @transform_4, window_bounds = array<i64: 1, 512>}, {pipeline_mode = #tpu.pipeline_mode<synchronous>, transform_indices = @transform_5, window_bounds = array<i64: 512, 128>}, {pipeline_mode = #tpu.pipeline_mode<synchronous>, transform_indices = @transform_6, window_bounds = array<i64: 1, 128>}, {transform_indices = @transform_7, window_bounds = array<i64: 8, 128>}]} {
    %c0 = arith.constant 0 : index
    %c0_0 = arith.constant 0 : index
    %0 = vector.load %arg1[%c0, %c0_0] : memref<8x768xbf16, #tpu.memory_space<vmem>>, vector<8x768xbf16>
    %c0_1 = arith.constant 0 : index
    %c0_2 = arith.constant 0 : index
    %1 = vector.load %arg2[%c0_1, %c0_2] : memref<768x768xbf16, #tpu.memory_space<vmem>>, vector<768x768xbf16>
    %cst = arith.constant dense<0.000000e+00> : vector<8x768xf32>
    %2 = tpu.matmul %0, %1, %cst {dimension_numbers = #tpu.dot_dimension_numbers<[1], [0], [0], [1], [0, 0, 1, 1], [], []>} : vector<8x768xbf16>, vector<768x768xbf16>, vector<8x768xf32> -> vector<8x768xf32>
    %c0_3 = arith.constant 0 : index
    %c0_4 = arith.constant 0 : index
    %3 = vector.load %arg3[%c0_3, %c0_4] : memref<1x768xf32, #tpu.memory_space<vmem>>, vector<1x768xf32>
    %4 = vector.broadcast %3 : vector<1x768xf32> to vector<8x768xf32>
    %5 = arith.addf %2, %4 : vector<8x768xf32>
    %6 = math.tanh %5 : vector<8x768xf32>
    %7 = arith.truncf %6 : vector<8x768xf32> to vector<8x768xbf16>
    %c0_5 = arith.constant 0 : index
    %c0_6 = arith.constant 0 : index
    %8 = vector.load %arg4[%c0_5, %c0_6] : memref<768x512xbf16, #tpu.memory_space<vmem>>, vector<768x512xbf16>
    %cst_7 = arith.constant dense<0.000000e+00> : vector<8x512xf32>
    %9 = tpu.matmul %7, %8, %cst_7 {dimension_numbers = #tpu.dot_dimension_numbers<[1], [0], [0], [1], [0, 0, 1, 1], [], []>} : vector<8x768xbf16>, vector<768x512xbf16>, vector<8x512xf32> -> vector<8x512xf32>
    %c0_8 = arith.constant 0 : index
    %c0_9 = arith.constant 0 : index
    %10 = vector.load %arg5[%c0_8, %c0_9] : memref<1x512xf32, #tpu.memory_space<vmem>>, vector<1x512xf32>
    %11 = vector.broadcast %10 : vector<1x512xf32> to vector<8x512xf32>
    %12 = arith.addf %9, %11 : vector<8x512xf32>
    %cst_10 = arith.constant 0.000000e+00 : f32
    %13 = vector.broadcast %cst_10 : f32 to vector<8x512xf32>
    %14 = arith.maximumf %12, %13 : vector<8x512xf32>
    %15 = arith.truncf %14 : vector<8x512xf32> to vector<8x512xbf16>
    %c0_11 = arith.constant 0 : index
    %c0_12 = arith.constant 0 : index
    %16 = vector.load %arg6[%c0_11, %c0_12] : memref<512x128xbf16, #tpu.memory_space<vmem>>, vector<512x128xbf16>
    %cst_13 = arith.constant dense<0.000000e+00> : vector<8x128xf32>
    %17 = tpu.matmul %15, %16, %cst_13 {dimension_numbers = #tpu.dot_dimension_numbers<[1], [0], [0], [1], [0, 0, 1, 1], [], []>} : vector<8x512xbf16>, vector<512x128xbf16>, vector<8x128xf32> -> vector<8x128xf32>
    %c0_14 = arith.constant 0 : index
    %c0_15 = arith.constant 0 : index
    %18 = vector.load %arg7[%c0_14, %c0_15] : memref<1x128xf32, #tpu.memory_space<vmem>>, vector<1x128xf32>
    %19 = vector.broadcast %18 : vector<1x128xf32> to vector<8x128xf32>
    %20 = arith.addf %17, %19 : vector<8x128xf32>
    %21 = tpu.iota {dimensions = array<i32: 1>} : vector<8x128xi32>
    %c2_i32 = arith.constant 2 : i32
    %22 = vector.broadcast %c2_i32 : i32 to vector<8x128xi32>
    %23 = arith.cmpi slt, %21, %22 : vector<8x128xi32>
    %cst_16 = arith.constant 0xFF800000 : f32
    %24 = vector.broadcast %cst_16 : f32 to vector<8x128xf32>
    %25 = arith.select %23, %20, %24 : vector<8x128xi1>, vector<8x128xf32>
    %cst_17 = arith.constant dense<0xFF800000> : vector<8xf32>
    %26 = vector.multi_reduction <maximumf>, %25, %cst_17 [1] : vector<8x128xf32> to vector<8xf32>
    %27 = vector.shape_cast %26 : vector<8xf32> to vector<8x1xf32>
    %28 = vector.broadcast %27 : vector<8x1xf32> to vector<8x128xf32>
    %29 = arith.subf %25, %28 : vector<8x128xf32>
    %30 = math.exp %29 : vector<8x128xf32>
    %cst_18 = arith.constant dense<0.000000e+00> : vector<8xf32>
    %31 = vector.multi_reduction <add>, %30, %cst_18 [1] : vector<8x128xf32> to vector<8xf32>
    %32 = vector.shape_cast %31 : vector<8xf32> to vector<8x1xf32>
    %33 = math.log %32 : vector<8x1xf32>
    %34 = vector.broadcast %33 : vector<8x1xf32> to vector<8x128xf32>
    %35 = arith.subf %29, %34 : vector<8x128xf32>
    %c0_19 = arith.constant 0 : index
    %c0_20 = arith.constant 0 : index
    %36 = vector.load %arg8[%c0_19, %c0_20] : memref<8x128xf32, #tpu.memory_space<vmem>>, vector<8x128xf32>
    tpu.vector_store %arg8[%c0_19, %c0_20], %35 {strides = array<i32>} : memref<8x128xf32, #tpu.memory_space<vmem>>, vector<8x128xf32>,
    return
  }
  func.func @transform_0(%arg0: i32) -> (i32, i32) {
    %c0_i32 = arith.constant 0 : i32
    %c0_i32_0 = arith.constant 0 : i32
    return %arg0, %c0_i32 : i32, i32
  }
  func.func @transform_1(%arg0: i32) -> (i32, i32) {
    %c0_i32 = arith.constant 0 : i32
    %c0_i32_0 = arith.constant 0 : i32
    %c0_i32_1 = arith.constant 0 : i32
    return %c0_i32, %c0_i32_0 : i32, i32
  }
  func.func @transform_2(%arg0: i32) -> (i32, i32) {
    %c0_i32 = arith.constant 0 : i32
    %c0_i32_0 = arith.constant 0 : i32
    %c0_i32_1 = arith.constant 0 : i32
    return %c0_i32, %c0_i32_0 : i32, i32
  }
  func.func @transform_3(%arg0: i32) -> (i32, i32) {
    %c0_i32 = arith.constant 0 : i32
    %c0_i32_0 = arith.constant 0 : i32
    %c0_i32_1 = arith.constant 0 : i32
    return %c0_i32, %c0_i32_0 : i32, i32
  }
  func.func @transform_4(%arg0: i32) -> (i32, i32) {
    %c0_i32 = arith.constant 0 : i32
    %c0_i32_0 = arith.constant 0 : i32
    %c0_i32_1 = arith.constant 0 : i32
    return %c0_i32, %c0_i32_0 : i32, i32
  }
  func.func @transform_5(%arg0: i32) -> (i32, i32) {
    %c0_i32 = arith.constant 0 : i32
    %c0_i32_0 = arith.constant 0 : i32
    %c0_i32_1 = arith.constant 0 : i32
    return %c0_i32, %c0_i32_0 : i32, i32
  }
  func.func @transform_6(%arg0: i32) -> (i32, i32) {
    %c0_i32 = arith.constant 0 : i32
    %c0_i32_0 = arith.constant 0 : i32
    %c0_i32_1 = arith.constant 0 : i32
    return %c0_i32, %c0_i32_0 : i32, i32
  }
  func.func @transform_7(%arg0: i32) -> (i32, i32) {
    %c0_i32 = arith.constant 0 : i32
    %c0_i32_0 = arith.constant 0 : i32
    return %arg0, %c0_i32 : i32, i32
  }
}

</mosaic_0001>

<bundles_post_ra>
// kernel: tpu_custom_call.1
= control target key start
LH: loop header
LB: loop body
LE: loop exit
PB: predicated region body
PF: predicated region fallthrough
CT: control target
= control target key end

     0   :  { %12 = vsyncpa [#allocation3], 0  ;;  %s5895_s0 = inlined_call_operand.hbm [shape: bf16[8,768], index: 0, kind: input, shape index: {}]   ;;  %s5896_s1 = inlined_call_operand.hbm [shape: bf16[768,768], index: 1, kind: input, shape index: {}]   ;;  %s5897_s2 = inlined_call_operand.hbm [shape: f32[1,768], index: 2, kind: input, shape index: {}]   ;;  %s5898_s3 = inlined_call_operand.hbm [shape: bf16[768,512], index: 3, kind: input, shape index: {}]   ;;  %s5899_s4 = inlined_call_operand.hbm [shape: f32[1,512], index: 4, kind: input, shape index: {}]   ;;  %s5900_s5 = inlined_call_operand.hbm [shape: bf16[512,128], index: 5, kind: input, shape index: {}]   ;;  %s5901_s6 = inlined_call_operand.hbm [shape: f32[1,128], index: 6, kind: input, shape index: {}]   ;;  %s5902_s7 = inlined_call_operand.hbm [shape: f32[8,128], index: 7, kind: output, shape index: {}]  }
   0x1   :  { %13 = vsyncpa [#allocation6], 0 }
   0x2   :  { %14 = vsyncpa [#allocation9], 0 }
   0x3   :  { %15 = vsyncpa [#allocation12], 0 }
   0x4   :  { %16 = vsyncpa [#allocation4], 0  ;;  %s5669_s24 = smov [#allocation5]   ;;  %s5483_s28 = scalar_lea.hbm %s5896_s1, 36864 }
   0x5   :  { %s32_s25 = sshll.u32 %s5669_s24, 4  ;;  %p5484_p0 = scmp.ne.s32.totalorder %s5896_s1, %s5483_s28  ;;  %s33_s25 = int_to_ptr.vmem [resolvable:$true] %s32_s25 }
   0x6   :  { %p5487_p1 = scmp.lt.u32.totalorder %s5483_s28, %s5896_s1 }
   0x8   :  { %p5489_p2 = pnand %p5487_p1, %p5484_p0 }
   0xa   :  { %5492 = shalt.err (!%p5489_p2)
}
   0xb   :  { %s5493_s10 = scalar_lea.vmem %s33_s25, 36864  ;;  %p5498_p4 = scmp.lt.s32.totalorder %s33_s25, %s33_s25 }
   0xc   :  { %p5494_p3 = scmp.ne.s32.totalorder %s33_s25, %s5493_s10  ;;  %p5499_p5 = scmp.lt.s32.totalorder %s5493_s10, %s5493_s10 }
   0xe   :  { %p5500_p6 = por %p5499_p5, %p5498_p4 }
  0x10   :  { %p5501_p7 = pnand %p5500_p6, %p5494_p3 }
  0x12   :  { %5504 = shalt.err (!%p5501_p7)
}
  0x13   :  { %s5670_s11 = smov 384   ;;  %s5671_s12 = smov 24  }
  0x14   :  { %38 = dma.hbm_to_vmem [thread:$0]  %s5896_s1, 36864, %s33_s25, [#allocation6], %s5670_s11, %s5670_s11, %s5671_s12  }
  0x15   :  { %s5672_s15 = smov [#allocation8]   ;;  %s5505_s19 = scalar_lea.hbm %s5898_s3, 24576 }
  0x16   :  { %s54_s16 = sshll.u32 %s5672_s15, 4  ;;  %p5506_p8 = scmp.ne.s32.totalorder %s5898_s3, %s5505_s19  ;;  %s55_s16 = int_to_ptr.vmem [resolvable:$true] %s54_s16 }
  0x17   :  { %p5509_p9 = scmp.lt.u32.totalorder %s5505_s19, %s5898_s3 }
  0x19   :  { %p5511_p10 = pnand %p5509_p9, %p5506_p8 }
  0x1b   :  { %5514 = shalt.err (!%p5511_p10)
}
  0x1c   :  { %s5515_s24 = scalar_lea.vmem %s55_s16, 24576  ;;  %p5520_p12 = scmp.lt.s32.totalorder %s55_s16, %s55_s16 }
  0x1d   :  { %p5516_p11 = scmp.ne.s32.totalorder %s55_s16, %s5515_s24  ;;  %p5521_p13 = scmp.lt.s32.totalorder %s5515_s24, %s5515_s24 }
  0x1f   :  { %p5522_p0 = por %p5521_p13, %p5520_p12 }
  0x21   :  { %p5523_p1 = pnand %p5522_p0, %p5516_p11 }
  0x23   :  { %5526 = shalt.err (!%p5523_p1)
}
  0x24   :  { %s5673_s1 = smov 256   ;;  %s5674_s25 = smov 16  }
  0x25   :  { %60 = dma.hbm_to_vmem [thread:$0]  %s5898_s3, 24576, %s55_s16, [#allocation9], %s5673_s1, %s5673_s1, %s5674_s25  }
  0x26   :  { %s5675_s28 = smov [#allocation11]   ;;  %s5527_s9 = scalar_lea.hbm %s5900_s5, 4096 }
  0x27   :  { %s76_s29 = sshll.u32 %s5675_s28, 4  ;;  %p5528_p2 = scmp.ne.s32.totalorder %s5900_s5, %s5527_s9  ;;  %s77_s29 = int_to_ptr.vmem [resolvable:$true] %s76_s29 }
  0x28   :  { %p5531_p3 = scmp.lt.u32.totalorder %s5527_s9, %s5900_s5 }
  0x2a   :  { %p5533_p4 = pnand %p5531_p3, %p5528_p2 }
  0x2c   :  { %5536 = shalt.err (!%p5533_p4)
}
  0x2d   :  { %s5537_s14 = scalar_lea.vmem %s77_s29, 4096  ;;  %p5542_p6 = scmp.lt.s32.totalorder %s77_s29, %s77_s29 }
  0x2e   :  { %p5538_p5 = scmp.ne.s32.totalorder %s77_s29, %s5537_s14  ;;  %p5543_p7 = scmp.lt.s32.totalorder %s5537_s14, %s5537_s14 }
  0x30   :  { %p5544_p8 = por %p5543_p7, %p5542_p6 }
  0x32   :  { %p5545_p9 = pnand %p5544_p8, %p5538_p5 }
  0x34   :  { %5548 = shalt.err (!%p5545_p9)
}
  0x35   :  { %s5676_s3 = smov 64   ;;  %s5677_s15 = smov 4  }
  0x36   :  { %82 = dma.hbm_to_vmem [thread:$0]  %s5900_s5, 4096, %s77_s29, [#allocation12], %s5676_s3, %s5676_s3, %s5677_s15  }
  0x37   :  { %s5678_s18 = smov [#allocation2]   ;;  %s5679_s20 = smov [#allocation7]  }
  0x38   :  { %s23_s19 = sshll.u32 %s5678_s18, 4  ;;  %s45_s21 = sshll.u32 %s5679_s20, 4  ;;  %s24_s19 = int_to_ptr.vmem [resolvable:$true] %s23_s19  ;;  %s46_s21 = int_to_ptr.vmem [resolvable:$true] %s45_s21 }
  0x39   :  { %s5549_s24 = scalar_lea.hbm %s5895_s0, 384 }
  0x3a   :  { %p5550_p10 = scmp.ne.s32.totalorder %s5895_s0, %s5549_s24  ;;  %p5553_p11 = scmp.lt.u32.totalorder %s5549_s24, %s5895_s0 }
  0x3c   :  { %p5555_p12 = pnand %p5553_p11, %p5550_p10 }
  0x3e   :  { %5558 = shalt.err (!%p5555_p12)
}
  0x3f   :  { %s5559_s5 = scalar_lea.vmem %s24_s19, 384  ;;  %p5564_p0 = scmp.lt.s32.totalorder %s24_s19, %s24_s19 }
  0x40   :  { %p5560_p13 = scmp.ne.s32.totalorder %s24_s19, %s5559_s5  ;;  %p5565_p1 = scmp.lt.s32.totalorder %s5559_s5, %s5559_s5 }
  0x42   :  { %p5566_p2 = por %p5565_p1, %p5564_p0 }
  0x44   :  { %p5567_p3 = pnand %p5566_p2, %p5560_p13 }
  0x46   :  { %5570 = shalt.err (!%p5567_p3)
}
  0x47   :  { %26 = dma.hbm_to_vmem [thread:$0]  %s5895_s0, 384, %s24_s19, [#allocation3]  }
  0x48   :  { %s5571_s9 = scalar_lea.hbm %s5897_s2, 96 }
  0x49   :  { %p5572_p4 = scmp.ne.s32.totalorder %s5897_s2, %s5571_s9  ;;  %p5575_p5 = scmp.lt.u32.totalorder %s5571_s9, %s5897_s2 }
  0x4b   :  { %p5577_p6 = pnand %p5575_p5, %p5572_p4 }
  0x4d   :  { %5580 = shalt.err (!%p5577_p6)
}
  0x4e   :  { %s5581_s14 = scalar_lea.vmem %s46_s21, 96  ;;  %p5586_p8 = scmp.lt.s32.totalorder %s46_s21, %s46_s21 }
  0x4f   :  { %p5582_p7 = scmp.ne.s32.totalorder %s46_s21, %s5581_s14  ;;  %p5587_p9 = scmp.lt.s32.totalorder %s5581_s14, %s5581_s14 }
  0x51   :  { %p5588_p10 = por %p5587_p9, %p5586_p8 }
  0x53   :  { %p5589_p11 = pnand %p5588_p10, %p5582_p7 }
  0x55   :  { %5592 = shalt.err (!%p5589_p11)
}
  0x56   :  { %48 = dma.hbm_to_vmem [thread:$0]  %s5897_s2, 96, %s46_s21, [#allocation6]  }
  0x57   :  { %s5680_s15 = smov [#allocation10]   ;;  %s5681_s17 = smov [#allocation13]  }
  0x58   :  { %s67_s16 = sshll.u32 %s5680_s15, 4  ;;  %s89_s18 = sshll.u32 %s5681_s17, 4  ;;  %s68_s16 = int_to_ptr.vmem [resolvable:$true] %s67_s16  ;;  %s90_s18 = int_to_ptr.vmem [resolvable:$true] %s89_s18 }
  0x59   :  { %s5593_s22 = scalar_lea.hbm %s5899_s4, 64 }
  0x5a   :  { %p5594_p12 = scmp.ne.s32.totalorder %s5899_s4, %s5593_s22  ;;  %p5597_p13 = scmp.lt.u32.totalorder %s5593_s22, %s5899_s4 }
  0x5c   :  { %p5599_p0 = pnand %p5597_p13, %p5594_p12 }
  0x5e   :  { %5602 = shalt.err (!%p5599_p0)
}
  0x5f   :  { %s5603_s2 = scalar_lea.vmem %s68_s16, 64  ;;  %p5608_p2 = scmp.lt.s32.totalorder %s68_s16, %s68_s16 }
  0x60   :  { %p5604_p1 = scmp.ne.s32.totalorder %s68_s16, %s5603_s2  ;;  %p5609_p3 = scmp.lt.s32.totalorder %s5603_s2, %s5603_s2 }
  0x62   :  { %p5610_p4 = por %p5609_p3, %p5608_p2 }
  0x64   :  { %p5611_p5 = pnand %p5610_p4, %p5604_p1 }
  0x66   :  { %5614 = shalt.err (!%p5611_p5)
}
  0x67   :  { %70 = dma.hbm_to_vmem [thread:$0]  %s5899_s4, 64, %s68_s16, [#allocation9]  }
  0x68   :  { %s5615_s28 = scalar_lea.hbm %s5901_s6, 16 }
  0x69   :  { %p5616_p6 = scmp.ne.s32.totalorder %s5901_s6, %s5615_s28  ;;  %p5619_p7 = scmp.lt.u32.totalorder %s5615_s28, %s5901_s6 }
  0x6b   :  { %p5621_p8 = pnand %p5619_p7, %p5616_p6 }
  0x6d   :  { %5624 = shalt.err (!%p5621_p8)
}
  0x6e   :  { %s5625_s10 = scalar_lea.vmem %s90_s18, 16  ;;  %s5629_s11 = scalar_lea.vmem %s90_s18, 32 }
  0x6f   :  { %p5626_p9 = scmp.ne.s32.totalorder %s90_s18, %s5625_s10  ;;  %p5630_p10 = scmp.lt.s32.totalorder %s90_s18, %s90_s18 }
  0x70   :  { %p5631_p11 = scmp.lt.s32.totalorder %s5629_s11, %s5625_s10 }
  0x72   :  { %p5632_p12 = por %p5631_p11, %p5630_p10 }
  0x74   :  { %p5633_p13 = pnand %p5632_p12, %p5626_p9 }
  0x76   :  { %5636 = shalt.err (!%p5633_p13)
}
  0x77   :  { %92 = dma.hbm_to_vmem [thread:$0]  %s5901_s6, 16, %s90_s18, [#allocation12]  }
  0x78   :  { %5659 = dma.done.wait [#allocation3], 384  }
  0x79   :  { %5660 = vsyncadd [#allocation3], 4294966912 }
  0x7a   :  { %5661 = dma.done.wait [#allocation6], 36960  }
  0x7b   :  { %5662 = vsyncadd [#allocation6], 4294930336 }
  0x7c   :  { %5663 = dma.done.wait [#allocation9], 24640  }
  0x7d   :  { %5664 = vsyncadd [#allocation9], 4294942656 }
  0x7e   :  { %5665 = dma.done.wait [#allocation12], 4112  }
  0x7f   :  { %5666 = vsyncadd [#allocation12], 4294963184  ;;  %v4709_v0 = vld [vmem:[#allocation5 + $0x4] ss:$24 sps:$4 sm:$0xff]   ;;  %v4713_v2 = vld [vmem:[#allocation5] ss:$24 sps:$4 sm:$0xff]  }
  0x80   :  { %v4711_v1 = vld [vmem:[#allocation5 + $0x304] ss:$24 sps:$4 sm:$0xff]   ;;  %1899 = vmatprep.subr.bf16.mxu1 %v4709_v0  ;;  %v4714_v3 = vld [vmem:[#allocation5 + $0x300] ss:$24 sps:$4 sm:$0xff]   ;;  %v4715_v4 = vld [vmem:[#allocation5 + $0x34] ss:$24 sps:$4 sm:$0xff]  }
  0x81   :  { %1940 = vmatprep.subr.bf16.mxu0 %v4711_v1  ;;  %1900 = vmatpush1.bf16.msra.mxu1 %v4713_v2  ;;  %v4717_v5 = vld [vmem:[#allocation5 + $0x334] ss:$24 sps:$4 sm:$0xff]   ;;  %v4719_v6 = vld [vmem:[#allocation5 + $0x30] ss:$24 sps:$4 sm:$0xff]   ;;  %v4721_v8 = vld [vmem:[#allocation5 + $0x64] ss:$24 sps:$4 sm:$0xff]  }
  0x82   :  { %1941 = vmatpush1.bf16.msra.mxu0 %v4714_v3  ;;  %1901 = vmatprep.subr.bf16.mxu1 %v4715_v4  ;;  %v4720_v7 = vld [vmem:[#allocation5 + $0x330] ss:$24 sps:$4 sm:$0xff]   ;;  %v4723_v9 = vld [vmem:[#allocation5 + $0x364] ss:$24 sps:$4 sm:$0xff]   ;;  %v4725_v10 = vld [vmem:[#allocation5 + $0x60] ss:$24 sps:$4 sm:$0xff]  }
  0x83   :  { %1942 = vmatprep.subr.bf16.mxu0 %v4717_v5  ;;  %v4726_v11 = vld [vmem:[#allocation5 + $0x360] ss:$24 sps:$4 sm:$0xff]   ;;  %v4727_v12 = vld [vmem:[#allocation5 + $0x94] ss:$24 sps:$4 sm:$0xff]   ;;  %v4731_v14 = vld [vmem:[#allocation5 + $0x90] ss:$24 sps:$4 sm:$0xff]  }
  0x84   :  { %v4729_v13 = vld [vmem:[#allocation5 + $0x394] ss:$24 sps:$4 sm:$0xff]   ;;  %v4732_v15 = vld [vmem:[#allocation5 + $0x390] ss:$24 sps:$4 sm:$0xff]   ;;  %v4733_v16 = vld [vmem:[#allocation5 + $0xc4] ss:$24 sps:$4 sm:$0xff]  }
  0x85   :  { %1902 = vmatpush1.bf16.msra.mxu1 %v4719_v6  ;;  %v4735_v17 = vld [vmem:[#allocation5 + $0x3c4] ss:$24 sps:$4 sm:$0xff]   ;;  %v4737_v18 = vld [vmem:[#allocation5 + $0xc0] ss:$24 sps:$4 sm:$0xff]   ;;  %v4739_v20 = vld [vmem:[#allocation5 + $0xf4] ss:$24 sps:$4 sm:$0xff]  }
  0x86   :  { %1943 = vmatpush1.bf16.msra.mxu0 %v4720_v7  ;;  %1903 = vmatprep.subr.bf16.mxu1 %v4721_v8  ;;  %v4738_v19 = vld [vmem:[#allocation5 + $0x3c0] ss:$24 sps:$4 sm:$0xff]   ;;  %v4741_v21 = vld [vmem:[#allocation5 + $0x3f4] ss:$24 sps:$4 sm:$0xff]   ;;  %v4743_v22 = vld [vmem:[#allocation5 + $0xf0] ss:$24 sps:$4 sm:$0xff]  }
  0x87   :  { %1944 = vmatprep.subr.bf16.mxu0 %v4723_v9  ;;  %v4744_v23 = vld [vmem:[#allocation5 + $0x3f0] ss:$24 sps:$4 sm:$0xff]   ;;  %v4745_v24 = vld [vmem:[#allocation5 + $0x124] ss:$24 sps:$4 sm:$0xff]   ;;  %v4749_v26 = vld [vmem:[#allocation5 + $0x120] ss:$24 sps:$4 sm:$0xff]  }
  0x88   :  { %v4747_v25 = vld [vmem:[#allocation5 + $0x424] ss:$24 sps:$4 sm:$0xff]   ;;  %v4750_v27 = vld [vmem:[#allocation5 + $0x420] ss:$24 sps:$4 sm:$0xff]   ;;  %v4751_v28 = vld [vmem:[#allocation5 + $0x154] ss:$24 sps:$4 sm:$0xff]  }
  0x89   :  { %1904 = vmatpush1.bf16.msra.mxu1 %v4725_v10  ;;  %v4753_v29 = vld [vmem:[#allocation5 + $0x454] ss:$24 sps:$4 sm:$0xff]   ;;  %v4755_v30 = vld [vmem:[#allocation5 + $0x150] ss:$24 sps:$4 sm:$0xff]   ;;  %v4757_v32 = vld [vmem:[#allocation5 + $0x184] ss:$24 sps:$4 sm:$0xff]  }
  0x8a   :  { %1945 = vmatpush1.bf16.msra.mxu0 %v4726_v11  ;;  %1905 = vmatprep.subr.bf16.mxu1 %v4727_v12  ;;  %v4756_v31 = vld [vmem:[#allocation5 + $0x450] ss:$24 sps:$4 sm:$0xff]   ;;  %v4759_v33 = vld [vmem:[#allocation5 + $0x484] ss:$24 sps:$4 sm:$0xff]   ;;  %v4761_v34 = vld [vmem:[#allocation5 + $0x180] ss:$24 sps:$4 sm:$0xff]  }
  0x8b   :  { %1946 = vmatprep.subr.bf16.mxu0 %v4729_v13  ;;  %v4762_v35 = vld [vmem:[#allocation5 + $0x480] ss:$24 sps:$4 sm:$0xff]   ;;  %v4763_v36 = vld [vmem:[#allocation5 + $0x1b4] ss:$24 sps:$4 sm:$0xff]   ;;  %v4767_v38 = vld [vmem:[#allocation5 + $0x1b0] ss:$24 sps:$4 sm:$0xff]  }
  0x8c   :  { %v4765_v37 = vld [vmem:[#allocation5 + $0x4b4] ss:$24 sps:$4 sm:$0xff]   ;;  %v4768_v39 = vld [vmem:[#allocation5 + $0x4b0] ss:$24 sps:$4 sm:$0xff]   ;;  %v4769_v40 = vld [vmem:[#allocation5 + $0x1e4] ss:$24 sps:$4 sm:$0xff]  }
  0x8d   :  { %1906 = vmatpush1.bf16.msra.mxu1 %v4731_v14  ;;  %v4771_v41 = vld [vmem:[#allocation5 + $0x4e4] ss:$24 sps:$4 sm:$0xff]   ;;  %v4773_v42 = vld [vmem:[#allocation5 + $0x1e0] ss:$24 sps:$4 sm:$0xff]   ;;  %v4775_v44 = vld [vmem:[#allocation5 + $0x214] ss:$24 sps:$4 sm:$0xff]  }
  0x8e   :  { %1947 = vmatpush1.bf16.msra.mxu0 %v4732_v15  ;;  %1907 = vmatprep.subr.bf16.mxu1 %v4733_v16  ;;  %v4774_v43 = vld [vmem:[#allocation5 + $0x4e0] ss:$24 sps:$4 sm:$0xff]   ;;  %v4777_v45 = vld [vmem:[#allocation5 + $0x514] ss:$24 sps:$4 sm:$0xff]   ;;  %v4779_v49 = vld [vmem:[#allocation5 + $0x210] ss:$24 sps:$4 sm:$0xff]  }
  0x8f   :  { %1948 = vmatprep.subr.bf16.mxu0 %v4735_v17  ;;  %v115_v46 = vld [vmem:[#allocation2] sm:$0xff]  ;;  %v116_v48 = vld [vmem:[#allocation2 + $0x8] sm:$0xff]  ;;  %v4781_v52 = vld [vmem:[#allocation5 + $0x244] ss:$24 sps:$4 sm:$0xff]   ;;  %s5682_s6 = smov [#allocation14]  }
  0x90   :  { %v5807_v47 = vcombine.high %v115_v46, %v115_v46  ;;  %v4780_v50 = vld [vmem:[#allocation5 + $0x510] ss:$24 sps:$4 sm:$0xff]   ;;  %v5809_v51 = vcombine.high %v116_v48, %v116_v48  ;;  %v4783_v53 = vld [vmem:[#allocation5 + $0x544] ss:$24 sps:$4 sm:$0xff]   ;;  %v4785_v54 = vld [vmem:[#allocation5 + $0x240] ss:$24 sps:$4 sm:$0xff]   ;;  %v5813_v6 = vcombine.low %v115_v46, %v115_v46  ;;  %v5815_v7 = vcombine.low %v116_v48, %v116_v48 }
  0x91   :  { %1908 = vmatpush1.bf16.msra.mxu1 %v4737_v18  ;;  %v4786_v55 = vld [vmem:[#allocation5 + $0x540] ss:$24 sps:$4 sm:$0xff]   ;;  %v4787_v56 = vld [vmem:[#allocation5 + $0x274] ss:$24 sps:$4 sm:$0xff]   ;;  %v4791_v58 = vld [vmem:[#allocation5 + $0x270] ss:$24 sps:$4 sm:$0xff]  }
  0x92   :  { %1949 = vmatpush1.bf16.msra.mxu0 %v4738_v19  ;;  %1909 = vmatprep.subr.bf16.mxu1 %v4739_v20  ;;  %v4789_v57 = vld [vmem:[#allocation5 + $0x574] ss:$24 sps:$4 sm:$0xff]   ;;  %v4792_v59 = vld [vmem:[#allocation5 + $0x570] ss:$24 sps:$4 sm:$0xff]   ;;  %v4793_v60 = vld [vmem:[#allocation5 + $0x2a4] ss:$24 sps:$4 sm:$0xff]  }
  0x93   :  { %1950 = vmatprep.subr.bf16.mxu0 %v4741_v21  ;;  %1931 = vmatprep.mubr.bf16.mxu1 %v5807_v47  ;;  %v4795_v61 = vld [vmem:[#allocation5 + $0x5a4] ss:$24 sps:$4 sm:$0xff]   ;;  %v4797_v62 = vld [vmem:[#allocation5 + $0x2a0] ss:$24 sps:$4 sm:$0xff]   ;;  %v4799_v0 = vld [vmem:[#allocation5 + $0x2d4] ss:$24 sps:$4 sm:$0xff]  }
  0x94   :  { %1972 = vmatprep.mubr.bf16.mxu0 %v5809_v51  ;;  %v4798_v63 = vld [vmem:[#allocation5 + $0x5a0] ss:$24 sps:$4 sm:$0xff]   ;;  %v4801_v1 = vld [vmem:[#allocation5 + $0x5d4] ss:$24 sps:$4 sm:$0xff]   ;;  %v4803_v2 = vld [vmem:[#allocation5 + $0x2d0] ss:$24 sps:$4 sm:$0xff]  }
  0x95   :  { %1910 = vmatpush1.bf16.msra.mxu1 %v4743_v22  ;;  %v4804_v3 = vld [vmem:[#allocation5 + $0x5d0] ss:$24 sps:$4 sm:$0xff]   ;;  %v4810_v4 = vld [vmem:[#allocation5 + $0x604] ss:$24 sps:$4 sm:$0xff]   ;;  %v4808_v8 = vld [vmem:[#allocation5 + $0x600] ss:$24 sps:$4 sm:$0xff]  }
  0x96   :  { %1951 = vmatpush1.bf16.msra.mxu0 %v4744_v23  ;;  %1911 = vmatprep.subr.bf16.mxu1 %v4745_v24  ;;  %v4813_v5 = vld [vmem:[#allocation5 + $0xc] ss:$24 sps:$4 sm:$0xff]   ;;  %v4811_v9 = vld [vmem:[#allocation5 + $0x8] ss:$24 sps:$4 sm:$0xff]   ;;  %v4820_v11 = vld [vmem:[#allocation5 + $0x3c] ss:$24 sps:$4 sm:$0xff]  }
  0x97   :  { %1952 = vmatprep.subr.bf16.mxu0 %v4747_v25  ;;  %v4817_v10 = vld [vmem:[#allocation5 + $0x634] ss:$24 sps:$4 sm:$0xff]   ;;  %v4815_v12 = vld [vmem:[#allocation5 + $0x630] ss:$24 sps:$4 sm:$0xff]   ;;  %v4823_v14 = vld [vmem:[#allocation5 + $0x664] ss:$24 sps:$4 sm:$0xff]  }
  0x98   :  { %v4818_v13 = vld [vmem:[#allocation5 + $0x38] ss:$24 sps:$4 sm:$0xff]   ;;  %v4826_v15 = vld [vmem:[#allocation5 + $0x6c] ss:$24 sps:$4 sm:$0xff]   ;;  %v4824_v17 = vld [vmem:[#allocation5 + $0x68] ss:$24 sps:$4 sm:$0xff]  }
  0x99   :  { %1912 = vmatpush1.bf16.msra.mxu1 %v4749_v26  ;;  %v4821_v16 = vld [vmem:[#allocation5 + $0x660] ss:$24 sps:$4 sm:$0xff]   ;;  %v4829_v18 = vld [vmem:[#allocation5 + $0x694] ss:$24 sps:$4 sm:$0xff]   ;;  %v4827_v20 = vld [vmem:[#allocation5 + $0x690] ss:$24 sps:$4 sm:$0xff]  }
  0x9a   :  { %1953 = vmatpush1.bf16.msra.mxu0 %v4750_v27  ;;  %1913 = vmatprep.subr.bf16.mxu1 %v4751_v28  ;;  %v4832_v19 = vld [vmem:[#allocation5 + $0x9c] ss:$24 sps:$4 sm:$0xff]   ;;  %v4830_v21 = vld [vmem:[#allocation5 + $0x98] ss:$24 sps:$4 sm:$0xff]   ;;  %v4838_v23 = vld [vmem:[#allocation5 + $0xcc] ss:$24 sps:$4 sm:$0xff]  }
  0x9b   :  { %1954 = vmatprep.subr.bf16.mxu0 %v4753_v29  ;;  %v4835_v22 = vld [vmem:[#allocation5 + $0x6c4] ss:$24 sps:$4 sm:$0xff]   ;;  %v4833_v24 = vld [vmem:[#allocation5 + $0x6c0] ss:$24 sps:$4 sm:$0xff]   ;;  %v4841_v26 = vld [vmem:[#allocation5 + $0x6f4] ss:$24 sps:$4 sm:$0xff]  }
  0x9c   :  { %v4836_v25 = vld [vmem:[#allocation5 + $0xc8] ss:$24 sps:$4 sm:$0xff]   ;;  %v4844_v27 = vld [vmem:[#allocation5 + $0xfc] ss:$24 sps:$4 sm:$0xff]   ;;  %v4842_v29 = vld [vmem:[#allocation5 + $0xf8] ss:$24 sps:$4 sm:$0xff]  }
  0x9d   :  { %1914 = vmatpush1.bf16.msra.mxu1 %v4755_v30  ;;  %v4839_v28 = vld [vmem:[#allocation5 + $0x6f0] ss:$24 sps:$4 sm:$0xff]   ;;  %v4847_v30 = vld [vmem:[#allocation5 + $0x724] ss:$24 sps:$4 sm:$0xff]   ;;  %s4072_s13 = sshll.u32 %s5682_s6, 4  ;;  %s4073_s13 = int_to_ptr.vmem [resolvable:$true] %s4072_s13 }
  0x9e   :  { %1955 = vmatpush1.bf16.msra.mxu0 %v4756_v31  ;;  %1915 = vmatprep.subr.bf16.mxu1 %v4757_v32  ;;  %v4850_v31 = vld [vmem:[#allocation5 + $0x12c] ss:$24 sps:$4 sm:$0xff]   ;;  %v5820_v32 = vld [vmem:[#allocation2 + $0x10] sm:$0xff]  ;;  %v4863_v46 = vld [vmem:[#allocation5 + $0x7b0] ss:$24 sps:$4 sm:$0xff]   ;;  %s5637_s14 = scalar_lea.vmem %s4073_s13, 128  ;;  %p5642_p1 = scmp.lt.s32.totalorder %s4073_s13, %s4073_s13 }
  0x9f   :  { %1956 = vmatprep.subr.bf16.mxu0 %v4759_v33  ;;  %v4845_v33 = vld [vmem:[#allocation5 + $0x720] ss:$24 sps:$4 sm:$0xff]   ;;  %p5638_p0 = scmp.ne.s32.totalorder %s4073_s13, %s5637_s14  ;;  %p5643_p2 = scmp.lt.s32.totalorder %s5637_s14, %s5637_s14 }
  0xa0   :  { %v4866_v48 = vld [vmem:[#allocation5 + $0x1b8] ss:$24 sps:$4 sm:$0xff]  }
  0xa1   :  { %1916 = vmatpush1.bf16.msra.mxu1 %v4761_v34  ;;  %v5824_v34 = vcombine.high %v5820_v32, %v5820_v32  ;;  %p5644_p3 = por %p5643_p2, %p5642_p1 }
  0xa2   :  { %1957 = vmatpush1.bf16.msra.mxu0 %v4762_v35  ;;  %1917 = vmatprep.subr.bf16.mxu1 %v4763_v36  ;;  %v4848_v35 = vld [vmem:[#allocation5 + $0x128] ss:$24 sps:$4 sm:$0xff]   ;;  %v4853_v36 = vld [vmem:[#allocation5 + $0x754] ss:$24 sps:$4 sm:$0xff]  }
  0xa3   :  { %1958 = vmatprep.subr.bf16.mxu0 %v4765_v37  ;;  %v4856_v37 = vld [vmem:[#allocation5 + $0x15c] ss:$24 sps:$4 sm:$0xff]   ;;  %p5645_p4 = pnand %p5644_p3, %p5638_p0 }
  0xa5   :  { %1918 = vmatpush1.bf16.msra.mxu1 %v4767_v38  ;;  %v4851_v38 = vld [vmem:[#allocation5 + $0x750] ss:$24 sps:$4 sm:$0xff]  }
  0xa6   :  { %1959 = vmatpush1.bf16.msra.mxu0 %v4768_v39  ;;  %1919 = vmatprep.subr.bf16.mxu1 %v4769_v40  ;;  %v4854_v39 = vld [vmem:[#allocation5 + $0x158] ss:$24 sps:$4 sm:$0xff]   ;;  %v4859_v40 = vld [vmem:[#allocation5 + $0x784] ss:$24 sps:$4 sm:$0xff]  }
  0xa7   :  { %1960 = vmatprep.subr.bf16.mxu0 %v4771_v41  ;;  %v4862_v41 = vld [vmem:[#allocation5 + $0x18c] ss:$24 sps:$4 sm:$0xff]  }
  0xa9   :  { %1920 = vmatpush1.bf16.msra.mxu1 %v4773_v42  ;;  %v4857_v42 = vld [vmem:[#allocation5 + $0x780] ss:$24 sps:$4 sm:$0xff]  }
  0xaa   :  { %1961 = vmatpush1.bf16.msra.mxu0 %v4774_v43  ;;  %1921 = vmatprep.subr.bf16.mxu1 %v4775_v44  ;;  %v4860_v43 = vld [vmem:[#allocation5 + $0x188] ss:$24 sps:$4 sm:$0xff]   ;;  %v4865_v44 = vld [vmem:[#allocation5 + $0x7b4] ss:$24 sps:$4 sm:$0xff]  }
  0xab   :  { %1962 = vmatprep.subr.bf16.mxu0 %v4777_v45  ;;  %v4868_v45 = vld [vmem:[#allocation5 + $0x1bc] ss:$24 sps:$4 sm:$0xff]  }
  0xad   :  { %1922 = vmatpush1.bf16.msra.mxu1 %v4779_v49  ;;  %v4871_v49 = vld [vmem:[#allocation5 + $0x7e4] ss:$24 sps:$4 sm:$0xff]  }
  0xae   :  { %1963 = vmatpush1.bf16.msra.mxu0 %v4780_v50  ;;  %1923 = vmatprep.subr.bf16.mxu1 %v4781_v52  ;;  %v4874_v50 = vld [vmem:[#allocation5 + $0x1ec] ss:$24 sps:$4 sm:$0xff]   ;;  %v4869_v52 = vld [vmem:[#allocation5 + $0x7e0] ss:$24 sps:$4 sm:$0xff]  }
  0xaf   :  { %1964 = vmatprep.subr.bf16.mxu0 %v4783_v53  ;;  %v4872_v53 = vld [vmem:[#allocation5 + $0x1e8] ss:$24 sps:$4 sm:$0xff]  }
  0xb1   :  { %1924 = vmatpush1.bf16.msra.mxu1 %v4785_v54  ;;  %v4877_v54 = vld [vmem:[#allocation5 + $0x814] ss:$24 sps:$4 sm:$0xff]  }
  0xb2   :  { %1965 = vmatpush1.bf16.msra.mxu0 %v4786_v55  ;;  %1925 = vmatprep.subr.bf16.mxu1 %v4787_v56  ;;  %v4880_v55 = vld [vmem:[#allocation5 + $0x21c] ss:$24 sps:$4 sm:$0xff]   ;;  %v4875_v56 = vld [vmem:[#allocation5 + $0x810] ss:$24 sps:$4 sm:$0xff]  }
  0xb3   :  { %1966 = vmatprep.subr.bf16.mxu0 %v4789_v57  ;;  %v4878_v57 = vld [vmem:[#allocation5 + $0x218] ss:$24 sps:$4 sm:$0xff]  }
  0xb5   :  { %1926 = vmatpush1.bf16.msra.mxu1 %v4791_v58  ;;  %v4883_v58 = vld [vmem:[#allocation5 + $0x844] ss:$24 sps:$4 sm:$0xff]  }
  0xb6   :  { %1967 = vmatpush1.bf16.msra.mxu0 %v4792_v59  ;;  %1927 = vmatprep.subr.bf16.mxu1 %v4793_v60  ;;  %v4886_v59 = vld [vmem:[#allocation5 + $0x24c] ss:$24 sps:$4 sm:$0xff]   ;;  %v4881_v60 = vld [vmem:[#allocation5 + $0x840] ss:$24 sps:$4 sm:$0xff]  }
  0xb7   :  { %1968 = vmatprep.subr.bf16.mxu0 %v4795_v61  ;;  %v4884_v61 = vld [vmem:[#allocation5 + $0x248] ss:$24 sps:$4 sm:$0xff]  }
  0xb9   :  { %1928 = vmatpush1.bf16.msra.mxu1 %v4797_v62  ;;  %v4889_v62 = vld [vmem:[#allocation5 + $0x874] ss:$24 sps:$4 sm:$0xff]  }
  0xba   :  { %1969 = vmatpush1.bf16.msra.mxu0 %v4798_v63  ;;  %1929 = vmatprep.subr.bf16.mxu1 %v4799_v0  ;;  %v4892_v63 = vld [vmem:[#allocation5 + $0x27c] ss:$24 sps:$4 sm:$0xff]   ;;  %v4887_v0 = vld [vmem:[#allocation5 + $0x870] ss:$24 sps:$4 sm:$0xff]  }
  0xbb   :  { %1970 = vmatprep.subr.bf16.mxu0 %v4801_v1  ;;  %v4890_v1 = vld [vmem:[#allocation5 + $0x278] ss:$24 sps:$4 sm:$0xff]  }
  0xbd   :  { %1930 = vmatpush1.bf16.msra.mxu1 %v4803_v2  ;;  %v4895_v2 = vld [vmem:[#allocation5 + $0x8a4] ss:$24 sps:$4 sm:$0xff]  }
  0xbe   :  { %1971 = vmatpush1.bf16.msra.mxu0 %v4804_v3  ;;  %2022 = vmatprep.subr.bf16.mxu1 %v4813_v5  ;;  %v4898_v3 = vld [vmem:[#allocation5 + $0x2ac] ss:$24 sps:$4 sm:$0xff]   ;;  %v4896_v5 = vld [vmem:[#allocation5 + $0x2a8] ss:$24 sps:$4 sm:$0xff]  }
  0xbf   :  { %1981 = vmatprep.subr.bf16.mxu0 %v4810_v4  ;;  %v4893_v4 = vld [vmem:[#allocation5 + $0x8a0] ss:$24 sps:$4 sm:$0xff]  }
  0xc0   :  { %1932 = vmatmul.mubr.bf16.vlgmr.msra.gmra.mrb[0].mxu1 %v5813_v6 }
  0xc1   :  { %1973 = vmatmul.mubr.bf16.vlgmr.msra.gmra.mrb[0].mxu0 %v5815_v7  ;;  %2023 = vmatpush1.bf16.msra.mxu1 %v4811_v9  ;;  %v4904_v9 = vld [vmem:[#allocation5 + $0x2dc] ss:$24 sps:$4 sm:$0xff]  }
  0xc2   :  { %1982 = vmatpush1.bf16.msra.mxu0 %v4808_v8  ;;  %2024 = vmatprep.subr.bf16.mxu1 %v4820_v11  ;;  %v4901_v8 = vld [vmem:[#allocation5 + $0x8d4] ss:$24 sps:$4 sm:$0xff]   ;;  %v4902_v11 = vld [vmem:[#allocation5 + $0x2d8] ss:$24 sps:$4 sm:$0xff]  }
  0xc3   :  { %1983 = vmatprep.subr.bf16.mxu0 %v4817_v10  ;;  %2054 = vmatprep.mubr.bf16.mxu1 %v5807_v47  ;;  %v4899_v10 = vld [vmem:[#allocation5 + $0x8d0] ss:$24 sps:$4 sm:$0xff]  }
  0xc4   :  { %2013 = vmatprep.mubr.bf16.mxu0 %v5824_v34 }
  0xc5   :  { %2025 = vmatpush1.bf16.msra.mxu1 %v4818_v13  ;;  %v4912_v13 = vld [vmem:[#allocation5 + $0x14] ss:$24 sps:$4 sm:$0xff]  }
  0xc6   :  { %1984 = vmatpush1.bf16.msra.mxu0 %v4815_v12  ;;  %2026 = vmatprep.subr.bf16.mxu1 %v4826_v15  ;;  %v4909_v12 = vld [vmem:[#allocation5 + $0x30c] ss:$24 sps:$4 sm:$0xff]   ;;  %v4907_v15 = vld [vmem:[#allocation5 + $0x308] ss:$24 sps:$4 sm:$0xff]  }
  0xc7   :  { %1985 = vmatprep.subr.bf16.mxu0 %v4823_v14  ;;  %v5829_v14 = vcombine.low %v5820_v32, %v5820_v32  ;;  %v4939_v32 = vld [vmem:[#allocation5 + $0x3fc] ss:$24 sps:$4 sm:$0xff]  }
  0xc9   :  { %2027 = vmatpush1.bf16.msra.mxu1 %v4824_v17  ;;  %v4915_v17 = vld [vmem:[#allocation5 + $0x33c] ss:$24 sps:$4 sm:$0xff]  }
  0xca   :  { %1986 = vmatpush1.bf16.msra.mxu0 %v4821_v16  ;;  %2028 = vmatprep.subr.bf16.mxu1 %v4832_v19  ;;  %v4910_v16 = vld [vmem:[#allocation5 + $0x10] ss:$24 sps:$4 sm:$0xff]  }
  0xcb   :  { %1987 = vmatprep.subr.bf16.mxu0 %v4829_v18  ;;  %v4918_v18 = vld [vmem:[#allocation5 + $0x44] ss:$24 sps:$4 sm:$0xff]   ;;  %v4913_v19 = vld [vmem:[#allocation5 + $0x338] ss:$24 sps:$4 sm:$0xff]  }
  0xcd   :  { %2029 = vmatpush1.bf16.msra.mxu1 %v4830_v21  ;;  %v4921_v21 = vld [vmem:[#allocation5 + $0x36c] ss:$24 sps:$4 sm:$0xff]  }
  0xce   :  { %1988 = vmatpush1.bf16.msra.mxu0 %v4827_v20  ;;  %2030 = vmatprep.subr.bf16.mxu1 %v4838_v23  ;;  %v4916_v20 = vld [vmem:[#allocation5 + $0x40] ss:$24 sps:$4 sm:$0xff]  }
  0xcf   :  { %1989 = vmatprep.subr.bf16.mxu0 %v4835_v22  ;;  %v4924_v22 = vld [vmem:[#allocation5 + $0x74] ss:$24 sps:$4 sm:$0xff]   ;;  %v4919_v23 = vld [vmem:[#allocation5 + $0x368] ss:$24 sps:$4 sm:$0xff]  }
  0xd1   :  { %2031 = vmatpush1.bf16.msra.mxu1 %v4836_v25  ;;  %v4927_v25 = vld [vmem:[#allocation5 + $0x39c] ss:$24 sps:$4 sm:$0xff]  }
  0xd2   :  { %1990 = vmatpush1.bf16.msra.mxu0 %v4833_v24  ;;  %2032 = vmatprep.subr.bf16.mxu1 %v4844_v27  ;;  %v4922_v24 = vld [vmem:[#allocation5 + $0x70] ss:$24 sps:$4 sm:$0xff]  }
  0xd3   :  { %1991 = vmatprep.subr.bf16.mxu0 %v4841_v26  ;;  %v4930_v26 = vld [vmem:[#allocation5 + $0xa4] ss:$24 sps:$4 sm:$0xff]   ;;  %v4925_v27 = vld [vmem:[#allocation5 + $0x398] ss:$24 sps:$4 sm:$0xff]  }
  0xd5   :  { %2033 = vmatpush1.bf16.msra.mxu1 %v4842_v29  ;;  %v4933_v29 = vld [vmem:[#allocation5 + $0x3cc] ss:$24 sps:$4 sm:$0xff]  }
  0xd6   :  { %1992 = vmatpush1.bf16.msra.mxu0 %v4839_v28  ;;  %2034 = vmatprep.subr.bf16.mxu1 %v4850_v31  ;;  %v4928_v28 = vld [vmem:[#allocation5 + $0xa0] ss:$24 sps:$4 sm:$0xff]  }
  0xd7   :  { %1993 = vmatprep.subr.bf16.mxu0 %v4847_v30  ;;  %v4936_v30 = vld [vmem:[#allocation5 + $0xd4] ss:$24 sps:$4 sm:$0xff]   ;;  %v4931_v31 = vld [vmem:[#allocation5 + $0x3c8] ss:$24 sps:$4 sm:$0xff]  }
  0xd9   :  { %2035 = vmatpush1.bf16.msra.mxu1 %v4848_v35  ;;  %v4937_v35 = vld [vmem:[#allocation5 + $0x3f8] ss:$24 sps:$4 sm:$0xff]  }
  0xda   :  { %1994 = vmatpush1.bf16.msra.mxu0 %v4845_v33  ;;  %2036 = vmatprep.subr.bf16.mxu1 %v4856_v37  ;;  %v4942_v33 = vld [vmem:[#allocation5 + $0x104] ss:$24 sps:$4 sm:$0xff]  }
  0xdb   :  { %1995 = vmatprep.subr.bf16.mxu0 %v4853_v36  ;;  %v4940_v36 = vld [vmem:[#allocation5 + $0x100] ss:$24 sps:$4 sm:$0xff]   ;;  %v4945_v37 = vld [vmem:[#allocation5 + $0x42c] ss:$24 sps:$4 sm:$0xff]  }
  0xdd   :  { %2037 = vmatpush1.bf16.msra.mxu1 %v4854_v39  ;;  %v4943_v39 = vld [vmem:[#allocation5 + $0x428] ss:$24 sps:$4 sm:$0xff]  }
  0xde   :  { %1996 = vmatpush1.bf16.msra.mxu0 %v4851_v38  ;;  %2038 = vmatprep.subr.bf16.mxu1 %v4862_v41  ;;  %v4948_v38 = vld [vmem:[#allocation5 + $0x134] ss:$24 sps:$4 sm:$0xff]  }
  0xdf   :  { %1997 = vmatprep.subr.bf16.mxu0 %v4859_v40  ;;  %v4946_v40 = vld [vmem:[#allocation5 + $0x130] ss:$24 sps:$4 sm:$0xff]   ;;  %v4951_v41 = vld [vmem:[#allocation5 + $0x45c] ss:$24 sps:$4 sm:$0xff]  }
  0xe1   :  { %2039 = vmatpush1.bf16.msra.mxu1 %v4860_v43  ;;  %v4949_v43 = vld [vmem:[#allocation5 + $0x458] ss:$24 sps:$4 sm:$0xff]  }
  0xe2   :  { %1998 = vmatpush1.bf16.msra.mxu0 %v4857_v42  ;;  %2040 = vmatprep.subr.bf16.mxu1 %v4868_v45  ;;  %v4954_v42 = vld [vmem:[#allocation5 + $0x164] ss:$24 sps:$4 sm:$0xff]  }
  0xe3   :  { %1999 = vmatprep.subr.bf16.mxu0 %v4865_v44  ;;  %v4952_v44 = vld [vmem:[#allocation5 + $0x160] ss:$24 sps:$4 sm:$0xff]   ;;  %v4957_v45 = vld [vmem:[#allocation5 + $0x48c] ss:$24 sps:$4 sm:$0xff]  }
  0xe5   :  { %2041 = vmatpush1.bf16.msra.mxu1 %v4866_v48  ;;  %v4955_v48 = vld [vmem:[#allocation5 + $0x488] ss:$24 sps:$4 sm:$0xff]  }
  0xe6   :  { %2000 = vmatpush1.bf16.msra.mxu0 %v4863_v46  ;;  %2042 = vmatprep.subr.bf16.mxu1 %v4874_v50  ;;  %v4960_v46 = vld [vmem:[#allocation5 + $0x194] ss:$24 sps:$4 sm:$0xff]  }
  0xe7   :  { %2001 = vmatprep.subr.bf16.mxu0 %v4871_v49  ;;  %v4958_v49 = vld [vmem:[#allocation5 + $0x190] ss:$24 sps:$4 sm:$0xff]   ;;  %v4963_v50 = vld [vmem:[#allocation5 + $0x4bc] ss:$24 sps:$4 sm:$0xff]  }
  0xe9   :  { %2043 = vmatpush1.bf16.msra.mxu1 %v4872_v53  ;;  %v4961_v53 = vld [vmem:[#allocation5 + $0x4b8] ss:$24 sps:$4 sm:$0xff]  }
  0xea   :  { %2002 = vmatpush1.bf16.msra.mxu0 %v4869_v52  ;;  %2044 = vmatprep.subr.bf16.mxu1 %v4880_v55  ;;  %v4966_v52 = vld [vmem:[#allocation5 + $0x1c4] ss:$24 sps:$4 sm:$0xff]  }
  0xeb   :  { %2003 = vmatprep.subr.bf16.mxu0 %v4877_v54  ;;  %v4964_v54 = vld [vmem:[#allocation5 + $0x1c0] ss:$24 sps:$4 sm:$0xff]   ;;  %v4969_v55 = vld [vmem:[#allocation5 + $0x4ec] ss:$24 sps:$4 sm:$0xff]  }
  0xed   :  { %2045 = vmatpush1.bf16.msra.mxu1 %v4878_v57  ;;  %v4967_v57 = vld [vmem:[#allocation5 + $0x4e8] ss:$24 sps:$4 sm:$0xff]  }
  0xee   :  { %2004 = vmatpush1.bf16.msra.mxu0 %v4875_v56  ;;  %2046 = vmatprep.subr.bf16.mxu1 %v4886_v59  ;;  %v4972_v56 = vld [vmem:[#allocation5 + $0x1f4] ss:$24 sps:$4 sm:$0xff]  }
  0xef   :  { %2005 = vmatprep.subr.bf16.mxu0 %v4883_v58  ;;  %v4970_v58 = vld [vmem:[#allocation5 + $0x1f0] ss:$24 sps:$4 sm:$0xff]   ;;  %v4975_v59 = vld [vmem:[#allocation5 + $0x51c] ss:$24 sps:$4 sm:$0xff]  }
  0xf1   :  { %2047 = vmatpush1.bf16.msra.mxu1 %v4884_v61  ;;  %v4973_v61 = vld [vmem:[#allocation5 + $0x518] ss:$24 sps:$4 sm:$0xff]  }
  0xf2   :  { %2006 = vmatpush1.bf16.msra.mxu0 %v4881_v60  ;;  %2048 = vmatprep.subr.bf16.mxu1 %v4892_v63  ;;  %v4978_v60 = vld [vmem:[#allocation5 + $0x224] ss:$24 sps:$4 sm:$0xff]  }
  0xf3   :  { %2007 = vmatprep.subr.bf16.mxu0 %v4889_v62  ;;  %v4976_v62 = vld [vmem:[#allocation5 + $0x220] ss:$24 sps:$4 sm:$0xff]   ;;  %v4981_v63 = vld [vmem:[#allocation5 + $0x54c] ss:$24 sps:$4 sm:$0xff]  }
  0xf5   :  { %2049 = vmatpush1.bf16.msra.mxu1 %v4890_v1  ;;  %v4979_v1 = vld [vmem:[#allocation5 + $0x548] ss:$24 sps:$4 sm:$0xff]  }
  0xf6   :  { %2008 = vmatpush1.bf16.msra.mxu0 %v4887_v0  ;;  %2050 = vmatprep.subr.bf16.mxu1 %v4898_v3  ;;  %v4984_v0 = vld [vmem:[#allocation5 + $0x254] ss:$24 sps:$4 sm:$0xff]  }
  0xf7   :  { %2009 = vmatprep.subr.bf16.mxu0 %v4895_v2  ;;  %v4982_v2 = vld [vmem:[#allocation5 + $0x250] ss:$24 sps:$4 sm:$0xff]   ;;  %v4987_v3 = vld [vmem:[#allocation5 + $0x57c] ss:$24 sps:$4 sm:$0xff]  }
  0xf9   :  { %2051 = vmatpush1.bf16.msra.mxu1 %v4896_v5  ;;  %v4985_v5 = vld [vmem:[#allocation5 + $0x578] ss:$24 sps:$4 sm:$0xff]  }
  0xfa   :  { %2010 = vmatpush1.bf16.msra.mxu0 %v4893_v4  ;;  %2052 = vmatprep.subr.bf16.mxu1 %v4904_v9  ;;  %v4990_v4 = vld [vmem:[#allocation5 + $0x284] ss:$24 sps:$4 sm:$0xff]  }
  0xfb   :  { %2011 = vmatprep.subr.bf16.mxu0 %v4901_v8  ;;  %v4988_v8 = vld [vmem:[#allocation5 + $0x280] ss:$24 sps:$4 sm:$0xff]   ;;  %v4993_v9 = vld [vmem:[#allocation5 + $0x5ac] ss:$24 sps:$4 sm:$0xff]  }
  0xfd   :  { %2053 = vmatpush1.bf16.msra.mxu1 %v4902_v11  ;;  %v4991_v11 = vld [vmem:[#allocation5 + $0x5a8] ss:$24 sps:$4 sm:$0xff]  }
  0xfe   :  { %2012 = vmatpush1.bf16.msra.mxu0 %v4899_v10  ;;  %2063 = vmatprep.subr.bf16.mxu1 %v4909_v12  ;;  %v4996_v10 = vld [vmem:[#allocation5 + $0x2b4] ss:$24 sps:$4 sm:$0xff]   ;;  %v4994_v12 = vld [vmem:[#allocation5 + $0x2b0] ss:$24 sps:$4 sm:$0xff]  }
  0xff   :  { %2145 = vmatprep.subr.bf16.mxu0 %v4912_v13  ;;  %v4999_v13 = vld [vmem:[#allocation5 + $0x5dc] ss:$24 sps:$4 sm:$0xff]  }
 0x100   :  { %2055 = vmatmul.mubr.bf16.vlgmr.msra.gmra.mrb[4].mxu1 %v5813_v6 }
 0x101   :  { %2014 = vmatmul.mubr.bf16.vlgmr.msra.gmra.mrb[0].mxu0 %v5829_v14  ;;  %2064 = vmatpush1.bf16.msra.mxu1 %v4907_v15  ;;  %v5002_v15 = vld [vmem:[#allocation5 + $0x2e4] ss:$24 sps:$4 sm:$0xff]  }
 0x102   :  { %2146 = vmatpush1.bf16.msra.mxu0 %v4910_v16  ;;  %2065 = vmatprep.subr.bf16.mxu1 %v4915_v17  ;;  %v4997_v16 = vld [vmem:[#allocation5 + $0x5d8] ss:$24 sps:$4 sm:$0xff]  }
 0x103   :  { %2147 = vmatprep.subr.bf16.mxu0 %v4918_v18  ;;  %2095 = vmatprep.mubr.bf16.mxu1 %v5809_v51  ;;  %v5000_v17 = vld [vmem:[#allocation5 + $0x2e0] ss:$24 sps:$4 sm:$0xff]   ;;  %v5005_v18 = vld [vmem:[#allocation5 + $0x60c] ss:$24 sps:$4 sm:$0xff]  }
 0x104   :  { %2177 = vmatprep.mubr.bf16.mxu0 %v5807_v47  ;;  %v4934_v47 = vld [vmem:[#allocation5 + $0xd0] ss:$24 sps:$4 sm:$0xff]  }
 0x105   :  { %2066 = vmatpush1.bf16.msra.mxu1 %v4913_v19  ;;  %v5008_v19 = vld [vmem:[#allocation5 + $0x314] ss:$24 sps:$4 sm:$0xff]  }
 0x106   :  { %2148 = vmatpush1.bf16.msra.mxu0 %v4916_v20  ;;  %2067 = vmatprep.subr.bf16.mxu1 %v4921_v21  ;;  %v5003_v20 = vld [vmem:[#allocation5 + $0x608] ss:$24 sps:$4 sm:$0xff]  }
 0x107   :  { %2149 = vmatprep.subr.bf16.mxu0 %v4924_v22  ;;  %v5006_v21 = vld [vmem:[#allocation5 + $0x310] ss:$24 sps:$4 sm:$0xff]   ;;  %v5011_v22 = vld [vmem:[#allocation5 + $0x63c] ss:$24 sps:$4 sm:$0xff]  }
 0x109   :  { %2068 = vmatpush1.bf16.msra.mxu1 %v4919_v23  ;;  %v5014_v23 = vld [vmem:[#allocation5 + $0x344] ss:$24 sps:$4 sm:$0xff]  }
 0x10a   :  { %2150 = vmatpush1.bf16.msra.mxu0 %v4922_v24  ;;  %2069 = vmatprep.subr.bf16.mxu1 %v4927_v25  ;;  %v5009_v24 = vld [vmem:[#allocation5 + $0x638] ss:$24 sps:$4 sm:$0xff]  }
 0x10b   :  { %2151 = vmatprep.subr.bf16.mxu0 %v4930_v26  ;;  %v5012_v25 = vld [vmem:[#allocation5 + $0x340] ss:$24 sps:$4 sm:$0xff]   ;;  %v5017_v26 = vld [vmem:[#allocation5 + $0x66c] ss:$24 sps:$4 sm:$0xff]  }
 0x10d   :  { %2070 = vmatpush1.bf16.msra.mxu1 %v4925_v27  ;;  %v5020_v27 = vld [vmem:[#allocation5 + $0x374] ss:$24 sps:$4 sm:$0xff]  }
 0x10e   :  { %2152 = vmatpush1.bf16.msra.mxu0 %v4928_v28  ;;  %2071 = vmatprep.subr.bf16.mxu1 %v4933_v29  ;;  %v5015_v28 = vld [vmem:[#allocation5 + $0x668] ss:$24 sps:$4 sm:$0xff]  }
 0x10f   :  { %2153 = vmatprep.subr.bf16.mxu0 %v4936_v30  ;;  %v5018_v29 = vld [vmem:[#allocation5 + $0x370] ss:$24 sps:$4 sm:$0xff]   ;;  %v5023_v30 = vld [vmem:[#allocation5 + $0x69c] ss:$24 sps:$4 sm:$0xff]  }
 0x111   :  { %2072 = vmatpush1.bf16.msra.mxu1 %v4931_v31  ;;  %v5021_v31 = vld [vmem:[#allocation5 + $0x698] ss:$24 sps:$4 sm:$0xff]  }
 0x112   :  { %2154 = vmatpush1.bf16.msra.mxu0 %v4934_v47  ;;  %2073 = vmatprep.subr.bf16.mxu1 %v4939_v32  ;;  %v5024_v47 = vld [vmem:[#allocation5 + $0x3a0] ss:$24 sps:$4 sm:$0xff]   ;;  %v5029_v32 = vld [vmem:[#allocation5 + $0x6cc] ss:$24 sps:$4 sm:$0xff]  }
 0x113   :  { %2155 = vmatprep.subr.bf16.mxu0 %v4942_v33  ;;  %v5032_v33 = vld [vmem:[#allocation5 + $0x3d4] ss:$24 sps:$4 sm:$0xff]  }
 0x115   :  { %2074 = vmatpush1.bf16.msra.mxu1 %v4937_v35  ;;  %v5027_v35 = vld [vmem:[#allocation5 + $0x6c8] ss:$24 sps:$4 sm:$0xff]  }
 0x116   :  { %2156 = vmatpush1.bf16.msra.mxu0 %v4940_v36  ;;  %2075 = vmatprep.subr.bf16.mxu1 %v4945_v37  ;;  %v5030_v36 = vld [vmem:[#allocation5 + $0x3d0] ss:$24 sps:$4 sm:$0xff]   ;;  %v5038_v37 = vld [vmem:[#allocation5 + $0x404] ss:$24 sps:$4 sm:$0xff]  }
 0x117   :  { %2157 = vmatprep.subr.bf16.mxu0 %v4948_v38  ;;  %v5033_v38 = vld [vmem:[#allocation5 + $0x6f8] ss:$24 sps:$4 sm:$0xff]  }
 0x119   :  { %2076 = vmatpush1.bf16.msra.mxu1 %v4943_v39  ;;  %v5036_v39 = vld [vmem:[#allocation5 + $0x400] ss:$24 sps:$4 sm:$0xff]  }
 0x11a   :  { %2158 = vmatpush1.bf16.msra.mxu0 %v4946_v40  ;;  %2077 = vmatprep.subr.bf16.mxu1 %v4951_v41  ;;  %v5041_v40 = vld [vmem:[#allocation5 + $0x72c] ss:$24 sps:$4 sm:$0xff]  }
 0x11b   :  { %2159 = vmatprep.subr.bf16.mxu0 %v4954_v42  ;;  %v5044_v41 = vld [vmem:[#allocation5 + $0x434] ss:$24 sps:$4 sm:$0xff]   ;;  %v5039_v42 = vld [vmem:[#allocation5 + $0x728] ss:$24 sps:$4 sm:$0xff]  }
 0x11d   :  { %2078 = vmatpush1.bf16.msra.mxu1 %v4949_v43  ;;  %v5042_v43 = vld [vmem:[#allocation5 + $0x430] ss:$24 sps:$4 sm:$0xff]  }
 0x11e   :  { %2160 = vmatpush1.bf16.msra.mxu0 %v4952_v44  ;;  %2079 = vmatprep.subr.bf16.mxu1 %v4957_v45  ;;  %v5047_v44 = vld [vmem:[#allocation5 + $0x75c] ss:$24 sps:$4 sm:$0xff]  }
 0x11f   :  { %2161 = vmatprep.subr.bf16.mxu0 %v4960_v46  ;;  %v5050_v45 = vld [vmem:[#allocation5 + $0x464] ss:$24 sps:$4 sm:$0xff]   ;;  %v5045_v46 = vld [vmem:[#allocation5 + $0x758] ss:$24 sps:$4 sm:$0xff]  }
 0x121   :  { %2080 = vmatpush1.bf16.msra.mxu1 %v4955_v48  ;;  %v5048_v48 = vld [vmem:[#allocation5 + $0x460] ss:$24 sps:$4 sm:$0xff]  }
 0x122   :  { %2162 = vmatpush1.bf16.msra.mxu0 %v4958_v49  ;;  %2081 = vmatprep.subr.bf16.mxu1 %v4963_v50  ;;  %v5053_v49 = vld [vmem:[#allocation5 + $0x78c] ss:$24 sps:$4 sm:$0xff]  }
 0x123   :  { %2163 = vmatprep.subr.bf16.mxu0 %v4966_v52  ;;  %v5056_v50 = vld [vmem:[#allocation5 + $0x494] ss:$24 sps:$4 sm:$0xff]   ;;  %v5051_v52 = vld [vmem:[#allocation5 + $0x788] ss:$24 sps:$4 sm:$0xff]  }
 0x125   :  { %2082 = vmatpush1.bf16.msra.mxu1 %v4961_v53  ;;  %v5054_v53 = vld [vmem:[#allocation5 + $0x490] ss:$24 sps:$4 sm:$0xff]  }
 0x126   :  { %2164 = vmatpush1.bf16.msra.mxu0 %v4964_v54  ;;  %2083 = vmatprep.subr.bf16.mxu1 %v4969_v55  ;;  %v5059_v54 = vld [vmem:[#allocation5 + $0x7bc] ss:$24 sps:$4 sm:$0xff]  }
 0x127   :  { %2165 = vmatprep.subr.bf16.mxu0 %v4972_v56  ;;  %v5062_v55 = vld [vmem:[#allocation5 + $0x4c4] ss:$24 sps:$4 sm:$0xff]   ;;  %v5057_v56 = vld [vmem:[#allocation5 + $0x7b8] ss:$24 sps:$4 sm:$0xff]  }
 0x129   :  { %2084 = vmatpush1.bf16.msra.mxu1 %v4967_v57  ;;  %v5060_v57 = vld [vmem:[#allocation5 + $0x4c0] ss:$24 sps:$4 sm:$0xff]  }
 0x12a   :  { %2166 = vmatpush1.bf16.msra.mxu0 %v4970_v58  ;;  %2085 = vmatprep.subr.bf16.mxu1 %v4975_v59  ;;  %v5065_v58 = vld [vmem:[#allocation5 + $0x7ec] ss:$24 sps:$4 sm:$0xff]  }
 0x12b   :  { %2167 = vmatprep.subr.bf16.mxu0 %v4978_v60  ;;  %v5068_v59 = vld [vmem:[#allocation5 + $0x4f4] ss:$24 sps:$4 sm:$0xff]   ;;  %v5063_v60 = vld [vmem:[#allocation5 + $0x7e8] ss:$24 sps:$4 sm:$0xff]  }
 0x12d   :  { %2086 = vmatpush1.bf16.msra.mxu1 %v4973_v61  ;;  %v5066_v61 = vld [vmem:[#allocation5 + $0x4f0] ss:$24 sps:$4 sm:$0xff]  }
 0x12e   :  { %2168 = vmatpush1.bf16.msra.mxu0 %v4976_v62  ;;  %2087 = vmatprep.subr.bf16.mxu1 %v4981_v63  ;;  %v5071_v62 = vld [vmem:[#allocation5 + $0x81c] ss:$24 sps:$4 sm:$0xff]  }
 0x12f   :  { %2169 = vmatprep.subr.bf16.mxu0 %v4984_v0  ;;  %v5074_v63 = vld [vmem:[#allocation5 + $0x524] ss:$24 sps:$4 sm:$0xff]   ;;  %v5069_v0 = vld [vmem:[#allocation5 + $0x818] ss:$24 sps:$4 sm:$0xff]  }
 0x131   :  { %2088 = vmatpush1.bf16.msra.mxu1 %v4979_v1  ;;  %v5072_v1 = vld [vmem:[#allocation5 + $0x520] ss:$24 sps:$4 sm:$0xff]  }
 0x132   :  { %2170 = vmatpush1.bf16.msra.mxu0 %v4982_v2  ;;  %2089 = vmatprep.subr.bf16.mxu1 %v4987_v3  ;;  %v5077_v2 = vld [vmem:[#allocation5 + $0x84c] ss:$24 sps:$4 sm:$0xff]  }
 0x133   :  { %2171 = vmatprep.subr.bf16.mxu0 %v4990_v4  ;;  %v5080_v3 = vld [vmem:[#allocation5 + $0x554] ss:$24 sps:$4 sm:$0xff]   ;;  %v5075_v4 = vld [vmem:[#allocation5 + $0x848] ss:$24 sps:$4 sm:$0xff]  }
 0x135   :  { %2090 = vmatpush1.bf16.msra.mxu1 %v4985_v5  ;;  %v5078_v5 = vld [vmem:[#allocation5 + $0x550] ss:$24 sps:$4 sm:$0xff]  }
 0x136   :  { %2172 = vmatpush1.bf16.msra.mxu0 %v4988_v8  ;;  %2091 = vmatprep.subr.bf16.mxu1 %v4993_v9  ;;  %v5083_v8 = vld [vmem:[#allocation5 + $0x87c] ss:$24 sps:$4 sm:$0xff]  }
 0x137   :  { %2173 = vmatprep.subr.bf16.mxu0 %v4996_v10  ;;  %v5086_v9 = vld [vmem:[#allocation5 + $0x584] ss:$24 sps:$4 sm:$0xff]   ;;  %v5081_v10 = vld [vmem:[#allocation5 + $0x878] ss:$24 sps:$4 sm:$0xff]  }
 0x139   :  { %2092 = vmatpush1.bf16.msra.mxu1 %v4991_v11  ;;  %v5084_v11 = vld [vmem:[#allocation5 + $0x580] ss:$24 sps:$4 sm:$0xff]  }
 0x13a   :  { %2174 = vmatpush1.bf16.msra.mxu0 %v4994_v12  ;;  %2093 = vmatprep.subr.bf16.mxu1 %v4999_v13  ;;  %v5089_v12 = vld [vmem:[#allocation5 + $0x8ac] ss:$24 sps:$4 sm:$0xff]  }
 0x13b   :  { %2175 = vmatprep.subr.bf16.mxu0 %v5002_v15  ;;  %v5092_v13 = vld [vmem:[#allocation5 + $0x5b4] ss:$24 sps:$4 sm:$0xff]   ;;  %v5087_v15 = vld [vmem:[#allocation5 + $0x8a8] ss:$24 sps:$4 sm:$0xff]  }
 0x13d   :  { %2094 = vmatpush1.bf16.msra.mxu1 %v4997_v16  ;;  %v5090_v16 = vld [vmem:[#allocation5 + $0x5b0] ss:$24 sps:$4 sm:$0xff]  }
 0x13e   :  { %2176 = vmatpush1.bf16.msra.mxu0 %v5000_v17  ;;  %2104 = vmatprep.subr.bf16.mxu1 %v5005_v18  ;;  %v5095_v17 = vld [vmem:[#allocation5 + $0x8dc] ss:$24 sps:$4 sm:$0xff]  }
 0x13f   :  { %2186 = vmatprep.subr.bf16.mxu0 %v5008_v19  ;;  %v5098_v18 = vld [vmem:[#allocation5 + $0x5e4] ss:$24 sps:$4 sm:$0xff]   ;;  %v5093_v19 = vld [vmem:[#allocation5 + $0x8d8] ss:$24 sps:$4 sm:$0xff]  }
 0x140   :  { %2096 = vmatmul.mubr.bf16.vlgmr.msra.gmra.mrb[4].mxu1 %v5815_v7 }
 0x141   :  { %2178 = vmatmul.mubr.bf16.vlgmr.msra.gmra.mrb[4].mxu0 %v5813_v6  ;;  %2105 = vmatpush1.bf16.msra.mxu1 %v5003_v20  ;;  %v5026_v6 = vld [vmem:[#allocation5 + $0x3a4] ss:$24 sps:$4 sm:$0xff]   ;;  %v5096_v20 = vld [vmem:[#allocation5 + $0x5e0] ss:$24 sps:$4 sm:$0xff]  }
 0x142   :  { %2187 = vmatpush1.bf16.msra.mxu0 %v5006_v21  ;;  %2106 = vmatprep.subr.bf16.mxu1 %v5011_v22  ;;  %v5101_v21 = vld [vmem:[#allocation5 + $0x614] ss:$24 sps:$4 sm:$0xff]  }
 0x143   :  { %2188 = vmatprep.subr.bf16.mxu0 %v5014_v23  ;;  %2136 = vmatprep.mubr.bf16.mxu1 %v5824_v34  ;;  %v5131_v22 = vld [vmem:[#allocation8 + $0x4] ss:$16 sps:$4 sm:$0xff]  }
 0x144   :  { %2218 = vmatprep.mubr.bf16.mxu0 %v5809_v51  ;;  %v5035_v51 = vld [vmem:[#allocation5 + $0x6fc] ss:$24 sps:$4 sm:$0xff]   ;;  %v5099_v23 = vld [vmem:[#allocation5 + $0x610] ss:$24 sps:$4 sm:$0xff]  }
 0x145   :  { %2107 = vmatpush1.bf16.msra.mxu1 %v5009_v24  ;;  %v5129_v24 = vld [vmem:[#allocation8] ss:$16 sps:$4 sm:$0xff]  }
 0x146   :  { %2189 = vmatpush1.bf16.msra.mxu0 %v5012_v25  ;;  %2108 = vmatprep.subr.bf16.mxu1 %v5017_v26  ;;  %v5104_v25 = vld [vmem:[#allocation5 + $0x644] ss:$24 sps:$4 sm:$0xff]  }
 0x147   :  { %2190 = vmatprep.subr.bf16.mxu0 %v5020_v27  ;;  %v5137_v26 = vld [vmem:[#allocation8 + $0x24] ss:$16 sps:$4 sm:$0xff]  }
 0x148   :  { %v5102_v27 = vld [vmem:[#allocation5 + $0x640] ss:$24 sps:$4 sm:$0xff]  }
 0x149   :  { %2109 = vmatpush1.bf16.msra.mxu1 %v5015_v28  ;;  %v5135_v28 = vld [vmem:[#allocation8 + $0x20] ss:$16 sps:$4 sm:$0xff]  }
 0x14a   :  { %2191 = vmatpush1.bf16.msra.mxu0 %v5018_v29  ;;  %2110 = vmatprep.subr.bf16.mxu1 %v5023_v30  ;;  %v5107_v29 = vld [vmem:[#allocation5 + $0x674] ss:$24 sps:$4 sm:$0xff]  }
 0x14b   :  { %2192 = vmatprep.subr.bf16.mxu0 %v5026_v6  ;;  %v5143_v30 = vld [vmem:[#allocation8 + $0x44] ss:$16 sps:$4 sm:$0xff]  }
 0x14c   :  { %v5105_v6 = vld [vmem:[#allocation5 + $0x670] ss:$24 sps:$4 sm:$0xff]  }
 0x14d   :  { %2111 = vmatpush1.bf16.msra.mxu1 %v5021_v31  ;;  %v5110_v31 = vld [vmem:[#allocation5 + $0x6a4] ss:$24 sps:$4 sm:$0xff]  }
 0x14e   :  { %2193 = vmatpush1.bf16.msra.mxu0 %v5024_v47  ;;  %2112 = vmatprep.subr.bf16.mxu1 %v5029_v32  ;;  %v5141_v47 = vld [vmem:[#allocation8 + $0x40] ss:$16 sps:$4 sm:$0xff]   ;;  %v5149_v32 = vld [vmem:[#allocation8 + $0x64] ss:$16 sps:$4 sm:$0xff]  }
 0x14f   :  { %2194 = vmatprep.subr.bf16.mxu0 %v5032_v33  ;;  %v5113_v33 = vld [vmem:[#allocation5 + $0x6d4] ss:$24 sps:$4 sm:$0xff]  }
 0x151   :  { %2113 = vmatpush1.bf16.msra.mxu1 %v5027_v35  ;;  %v5147_v35 = vld [vmem:[#allocation8 + $0x60] ss:$16 sps:$4 sm:$0xff]  }
 0x152   :  { %2195 = vmatpush1.bf16.msra.mxu0 %v5030_v36  ;;  %2114 = vmatprep.subr.bf16.mxu1 %v5035_v51  ;;  %v5155_v36 = vld [vmem:[#allocation8 + $0x84] ss:$16 sps:$4 sm:$0xff]  }
 0x153   :  { %2196 = vmatprep.subr.bf16.mxu0 %v5038_v37  ;;  %v5111_v51 = vld [vmem:[#allocation5 + $0x6d0] ss:$24 sps:$4 sm:$0xff]   ;;  %v5116_v37 = vld [vmem:[#allocation5 + $0x704] ss:$24 sps:$4 sm:$0xff]  }
 0x155   :  { %2115 = vmatpush1.bf16.msra.mxu1 %v5033_v38  ;;  %v5161_v38 = vld [vmem:[#allocation8 + $0xa4] ss:$16 sps:$4 sm:$0xff]  }
 0x156   :  { %2197 = vmatpush1.bf16.msra.mxu0 %v5036_v39  ;;  %2116 = vmatprep.subr.bf16.mxu1 %v5041_v40  ;;  %v5114_v39 = vld [vmem:[#allocation5 + $0x700] ss:$24 sps:$4 sm:$0xff]   ;;  %v5119_v40 = vld [vmem:[#allocation5 + $0x734] ss:$24 sps:$4 sm:$0xff]  }
 0x157   :  { %2198 = vmatprep.subr.bf16.mxu0 %v5044_v41  ;;  %v5159_v41 = vld [vmem:[#allocation8 + $0xa0] ss:$16 sps:$4 sm:$0xff]  }
 0x159   :  { %2117 = vmatpush1.bf16.msra.mxu1 %v5039_v42  ;;  %v5167_v42 = vld [vmem:[#allocation8 + $0xc4] ss:$16 sps:$4 sm:$0xff]  }
 0x15a   :  { %2199 = vmatpush1.bf16.msra.mxu0 %v5042_v43  ;;  %2118 = vmatprep.subr.bf16.mxu1 %v5047_v44 }
 0x15b   :  { %2200 = vmatprep.subr.bf16.mxu0 %v5050_v45 }
 0x15d   :  { %2119 = vmatpush1.bf16.msra.mxu1 %v5045_v46  ;;  %v5117_v46 = vld [vmem:[#allocation5 + $0x730] ss:$24 sps:$4 sm:$0xff]  }
 0x15e   :  { %2201 = vmatpush1.bf16.msra.mxu0 %v5048_v48  ;;  %2120 = vmatprep.subr.bf16.mxu1 %v5053_v49  ;;  %v5165_v48 = vld [vmem:[#allocation8 + $0xc0] ss:$16 sps:$4 sm:$0xff]  }
 0x15f   :  { %2202 = vmatprep.subr.bf16.mxu0 %v5056_v50  ;;  %v5122_v50 = vld [vmem:[#allocation5 + $0x764] ss:$24 sps:$4 sm:$0xff]  }
 0x161   :  { %2121 = vmatpush1.bf16.msra.mxu1 %v5051_v52  ;;  %v5173_v52 = vld [vmem:[#allocation8 + $0xe4] ss:$16 sps:$4 sm:$0xff]  }
 0x162   :  { %2203 = vmatpush1.bf16.msra.mxu0 %v5054_v53  ;;  %2122 = vmatprep.subr.bf16.mxu1 %v5059_v54  ;;  %v5120_v53 = vld [vmem:[#allocation5 + $0x760] ss:$24 sps:$4 sm:$0xff]   ;;  %v5125_v54 = vld [vmem:[#allocation5 + $0x794] ss:$24 sps:$4 sm:$0xff]  }
 0x163   :  { %2204 = vmatprep.subr.bf16.mxu0 %v5062_v55  ;;  %v5171_v55 = vld [vmem:[#allocation8 + $0xe0] ss:$16 sps:$4 sm:$0xff]  }
 0x165   :  { %2123 = vmatpush1.bf16.msra.mxu1 %v5057_v56  ;;  %v5179_v56 = vld [vmem:[#allocation8 + $0x104] ss:$16 sps:$4 sm:$0xff]  }
 0x166   :  { %2205 = vmatpush1.bf16.msra.mxu0 %v5060_v57  ;;  %2124 = vmatprep.subr.bf16.mxu1 %v5065_v58  ;;  %v5123_v57 = vld [vmem:[#allocation5 + $0x790] ss:$24 sps:$4 sm:$0xff]   ;;  %v5128_v58 = vld [vmem:[#allocation5 + $0x7c4] ss:$24 sps:$4 sm:$0xff]  }
 0x167   :  { %2206 = vmatprep.subr.bf16.mxu0 %v5068_v59  ;;  %v5177_v59 = vld [vmem:[#allocation8 + $0x100] ss:$16 sps:$4 sm:$0xff]  }
 0x169   :  { %2125 = vmatpush1.bf16.msra.mxu1 %v5063_v60  ;;  %v5185_v60 = vld [vmem:[#allocation8 + $0x124] ss:$16 sps:$4 sm:$0xff]  }
 0x16a   :  { %2207 = vmatpush1.bf16.msra.mxu0 %v5066_v61  ;;  %2126 = vmatprep.subr.bf16.mxu1 %v5071_v62  ;;  %v5126_v61 = vld [vmem:[#allocation5 + $0x7c0] ss:$24 sps:$4 sm:$0xff]   ;;  %v5134_v62 = vld [vmem:[#allocation5 + $0x7f4] ss:$24 sps:$4 sm:$0xff]  }
 0x16b   :  { %2208 = vmatprep.subr.bf16.mxu0 %v5074_v63  ;;  %v5183_v63 = vld [vmem:[#allocation8 + $0x120] ss:$16 sps:$4 sm:$0xff]  }
 0x16d   :  { %2127 = vmatpush1.bf16.msra.mxu1 %v5069_v0  ;;  %v5191_v0 = vld [vmem:[#allocation8 + $0x144] ss:$16 sps:$4 sm:$0xff]  }
 0x16e   :  { %2209 = vmatpush1.bf16.msra.mxu0 %v5072_v1  ;;  %2128 = vmatprep.subr.bf16.mxu1 %v5077_v2  ;;  %v5132_v1 = vld [vmem:[#allocation5 + $0x7f0] ss:$24 sps:$4 sm:$0xff]   ;;  %v5140_v2 = vld [vmem:[#allocation5 + $0x824] ss:$24 sps:$4 sm:$0xff]  }
 0x16f   :  { %2210 = vmatprep.subr.bf16.mxu0 %v5080_v3  ;;  %v5189_v3 = vld [vmem:[#allocation8 + $0x140] ss:$16 sps:$4 sm:$0xff]  }
 0x171   :  { %2129 = vmatpush1.bf16.msra.mxu1 %v5075_v4  ;;  %v5197_v4 = vld [vmem:[#allocation8 + $0x164] ss:$16 sps:$4 sm:$0xff]  }
 0x172   :  { %2211 = vmatpush1.bf16.msra.mxu0 %v5078_v5  ;;  %2130 = vmatprep.subr.bf16.mxu1 %v5083_v8  ;;  %v5138_v5 = vld [vmem:[#allocation5 + $0x820] ss:$24 sps:$4 sm:$0xff]   ;;  %v5146_v8 = vld [vmem:[#allocation5 + $0x854] ss:$24 sps:$4 sm:$0xff]  }
 0x173   :  { %2212 = vmatprep.subr.bf16.mxu0 %v5086_v9  ;;  %v5195_v9 = vld [vmem:[#allocation8 + $0x160] ss:$16 sps:$4 sm:$0xff]  }
 0x175   :  { %2131 = vmatpush1.bf16.msra.mxu1 %v5081_v10  ;;  %v5203_v10 = vld [vmem:[#allocation8 + $0x184] ss:$16 sps:$4 sm:$0xff]  }
 0x176   :  { %2213 = vmatpush1.bf16.msra.mxu0 %v5084_v11  ;;  %2132 = vmatprep.subr.bf16.mxu1 %v5089_v12  ;;  %v5144_v11 = vld [vmem:[#allocation5 + $0x850] ss:$24 sps:$4 sm:$0xff]  }
 0x177   :  { %2214 = vmatprep.subr.bf16.mxu0 %v5092_v13  ;;  %v5201_v12 = vld [vmem:[#allocation8 + $0x180] ss:$16 sps:$4 sm:$0xff]  }
 0x178   :  { %v5152_v13 = vld [vmem:[#allocation5 + $0x884] ss:$24 sps:$4 sm:$0xff]  }
 0x179   :  { %2133 = vmatpush1.bf16.msra.mxu1 %v5087_v15  ;;  %v5209_v15 = vld [vmem:[#allocation8 + $0x1a4] ss:$16 sps:$4 sm:$0xff]  }
 0x17a   :  { %2215 = vmatpush1.bf16.msra.mxu0 %v5090_v16  ;;  %2134 = vmatprep.subr.bf16.mxu1 %v5095_v17  ;;  %v5150_v16 = vld [vmem:[#allocation5 + $0x880] ss:$24 sps:$4 sm:$0xff]  }
 0x17b   :  { %2216 = vmatprep.subr.bf16.mxu0 %v5098_v18  ;;  %v5207_v17 = vld [vmem:[#allocation8 + $0x1a0] ss:$16 sps:$4 sm:$0xff]  }
 0x17c   :  { %v5158_v18 = vld [vmem:[#allocation5 + $0x8b4] ss:$24 sps:$4 sm:$0xff]  }
 0x17d   :  { %2135 = vmatpush1.bf16.msra.mxu1 %v5093_v19  ;;  %v5215_v19 = vld [vmem:[#allocation8 + $0x1c4] ss:$16 sps:$4 sm:$0xff]  }
 0x17e   :  { %2217 = vmatpush1.bf16.msra.mxu0 %v5096_v20  ;;  %3454 = vmatprep.subr.bf16.mxu1 %v5131_v22  ;;  %v5156_v20 = vld [vmem:[#allocation5 + $0x8b0] ss:$24 sps:$4 sm:$0xff]   ;;  %v5164_v22 = vld [vmem:[#allocation5 + $0x8e4] ss:$24 sps:$4 sm:$0xff]  }
 0x17f   :  { %2227 = vmatprep.subr.bf16.mxu0 %v5101_v21  ;;  %v5213_v21 = vld [vmem:[#allocation8 + $0x1c0] ss:$16 sps:$4 sm:$0xff]  }
 0x180   :  { %2137 = vmatmul.mubr.bf16.vlgmr.msra.gmra.mrb[4].mxu1 %v5829_v14 }
 0x181   :  { %2219 = vmatmul.mubr.bf16.vlgmr.msra.gmra.mrb[4].mxu0 %v5815_v7  ;;  %3455 = vmatpush1.bf16.msra.mxu1 %v5129_v24  ;;  %v5108_v7 = vld [vmem:[#allocation5 + $0x6a0] ss:$24 sps:$4 sm:$0xff]  }
 0x182   :  { %2228 = vmatpush1.bf16.msra.mxu0 %v5099_v23  ;;  %3456 = vmatprep.subr.bf16.mxu1 %v5137_v26  ;;  %v5221_v23 = vld [vmem:[#allocation8 + $0x1e4] ss:$16 sps:$4 sm:$0xff]   ;;  %v5170_v26 = vld [vmem:[#allocation8 + $0xc] ss:$16 sps:$4 sm:$0xff]  }
 0x183   :  { %2229 = vmatprep.subr.bf16.mxu0 %v5104_v25  ;;  %2259 = vmatprep.mubr.bf16.mxu0 %v5824_v34  ;;  %v5153_v34 = vld [vmem:[#allocation8 + $0x80] ss:$16 sps:$4 sm:$0xff]  }
 0x184   :  { %v5162_v24 = vld [vmem:[#allocation5 + $0x8e0] ss:$24 sps:$4 sm:$0xff]  }
 0x185   :  { %3457 = vmatpush1.bf16.msra.mxu1 %v5135_v28  ;;  %v5219_v25 = vld [vmem:[#allocation8 + $0x1e0] ss:$16 sps:$4 sm:$0xff]   ;;  %v5168_v28 = vld [vmem:[#allocation8 + $0x8] ss:$16 sps:$4 sm:$0xff]  }
 0x186   :  { %2230 = vmatpush1.bf16.msra.mxu0 %v5102_v27  ;;  %3458 = vmatprep.subr.bf16.mxu1 %v5143_v30  ;;  %v5245_v27 = vld [vmem:[#allocation8 + $0x204] ss:$16 sps:$4 sm:$0xff]   ;;  %v5174_v30 = vld [vmem:[#allocation8 + $0x28] ss:$16 sps:$4 sm:$0xff]  }
 0x187   :  { %2231 = vmatprep.subr.bf16.mxu0 %v5107_v29  ;;  %v5176_v29 = vld [vmem:[#allocation8 + $0x2c] ss:$16 sps:$4 sm:$0xff]  }
 0x189   :  { %3459 = vmatpush1.bf16.msra.mxu1 %v5141_v47  ;;  %v5180_v47 = vld [vmem:[#allocation8 + $0x48] ss:$16 sps:$4 sm:$0xff]  }
 0x18a   :  { %2232 = vmatpush1.bf16.msra.mxu0 %v5105_v6  ;;  %3460 = vmatprep.subr.bf16.mxu1 %v5149_v32  ;;  %v408_v6 = vlaneseq }
 0x18b   :  { %2233 = vmatprep.subr.bf16.mxu0 %v5110_v31  ;;  %v5182_v31 = vld [vmem:[#allocation8 + $0x4c] ss:$16 sps:$4 sm:$0xff]  }
 0x18c   :  { %v5848_v32 = vshrl.u32 %v408_v6, 7 }
 0x18d   :  { %3461 = vmatpush1.bf16.msra.mxu1 %v5147_v35 }
 0x18e   :  { %2234 = vmatpush1.bf16.msra.mxu0 %v5108_v7  ;;  %3462 = vmatprep.subr.bf16.mxu1 %v5155_v36  ;;  %v5188_v7 = vld [vmem:[#allocation8 + $0x6c] ss:$16 sps:$4 sm:$0xff]   ;;  %v410_v35 = vsub.s32 0, %v5848_v32 }
 0x18f   :  { %2235 = vmatprep.subr.bf16.mxu0 %v5113_v33  ;;  %v5186_v33 = vld [vmem:[#allocation8 + $0x68] ss:$16 sps:$4 sm:$0xff]   ;;  %v5194_v36 = vld [vmem:[#allocation8 + $0x8c] ss:$16 sps:$4 sm:$0xff]  }
 0x191   :  { %3463 = vmatpush1.bf16.msra.mxu1 %v5153_v34 }
 0x192   :  { %2236 = vmatpush1.bf16.msra.mxu0 %v5111_v51  ;;  %3464 = vmatprep.subr.bf16.mxu1 %v5161_v38  ;;  %v5851_v51 = vld [vmem:[#allocation7] sm:$0x3f] }
 0x193   :  { %2237 = vmatprep.subr.bf16.mxu0 %v5116_v37  ;;  %v5842_v43 = vpop.f32.mrb[0].mxu1  ;;  %v5192_v37 = vld [vmem:[#allocation8 + $0x88] ss:$16 sps:$4 sm:$0xff]   ;;  %v411_v34 = vrot.slane %v5851_v51, %v410_v35  ;;  %v5200_v38 = vld [vmem:[#allocation8 + $0xac] ss:$16 sps:$4 sm:$0xff]  }
 0x194   :  { %v5844_v44 = vpop.f32.mrb[1].mxu1 }
 0x195   :  { %v1937_v45 = vpop.f32.mrb[2].mxu1  ;;  %3465 = vmatpush1.bf16.msra.mxu1 %v5159_v41  ;;  %v1934_v41 = vadd.f32 %v5842_v43, %v411_v34  ;;  %v5218_v43 = vld [vmem:[#allocation8 + $0x10c] ss:$16 sps:$4 sm:$0xff]   ;;  %v5258_v34 = vld [vmem:[#allocation8 + $0x248] ss:$16 sps:$4 sm:$0xff]  }
 0x196   :  { %2238 = vmatpush1.bf16.msra.mxu0 %v5114_v39  ;;  %v1938_v49 = vpop.f32.mrb[3].mxu1  ;;  %3466 = vmatprep.subr.bf16.mxu1 %v5167_v42  ;;  %v5206_v42 = vld [vmem:[#allocation8 + $0xcc] ss:$16 sps:$4 sm:$0xff]  }
 0x197   :  { %2239 = vmatprep.subr.bf16.mxu0 %v5119_v40  ;;  %v5198_v40 = vld [vmem:[#allocation8 + $0xa8] ss:$16 sps:$4 sm:$0xff]  }
 0x199   :  { %3467 = vmatpush1.bf16.msra.mxu1 %v5165_v48 }
 0x19a   :  { %2240 = vmatpush1.bf16.msra.mxu0 %v5117_v46  ;;  %3468 = vmatprep.subr.bf16.mxu1 %v5173_v52 }
 0x19b   :  { %2241 = vmatprep.subr.bf16.mxu0 %v5122_v50 }
 0x19d   :  { %3469 = vmatpush1.bf16.msra.mxu1 %v5171_v55  ;;  %v5212_v55 = vld [vmem:[#allocation8 + $0xec] ss:$16 sps:$4 sm:$0xff]  }
 0x19e   :  { %2242 = vmatpush1.bf16.msra.mxu0 %v5120_v53  ;;  %3470 = vmatprep.subr.bf16.mxu1 %v5179_v56  ;;  %v5204_v53 = vld [vmem:[#allocation8 + $0xc8] ss:$16 sps:$4 sm:$0xff]  }
 0x19f   :  { %2243 = vmatprep.subr.bf16.mxu0 %v5125_v54  ;;  %v5210_v56 = vld [vmem:[#allocation8 + $0xe8] ss:$16 sps:$4 sm:$0xff]  }
 0x1a1   :  { %3471 = vmatpush1.bf16.msra.mxu1 %v5177_v59 }
 0x1a2   :  { %2244 = vmatpush1.bf16.msra.mxu0 %v5123_v57  ;;  %3472 = vmatprep.subr.bf16.mxu1 %v5185_v60  ;;  %v5216_v57 = vld [vmem:[#allocation8 + $0x108] ss:$16 sps:$4 sm:$0xff]  }
 0x1a3   :  { %2245 = vmatprep.subr.bf16.mxu0 %v5128_v58  ;;  %v5222_v60 = vld [vmem:[#allocation8 + $0x128] ss:$16 sps:$4 sm:$0xff]  }
 0x1a5   :  { %3473 = vmatpush1.bf16.msra.mxu1 %v5183_v63  ;;  %v5243_v63 = vld [vmem:[#allocation8 + $0x200] ss:$16 sps:$4 sm:$0xff]  }
 0x1a6   :  { %2246 = vmatpush1.bf16.msra.mxu0 %v5126_v61  ;;  %3474 = vmatprep.subr.bf16.mxu1 %v5191_v0 }
 0x1a7   :  { %2247 = vmatprep.subr.bf16.mxu0 %v5134_v62  ;;  %v5227_v62 = vld [vmem:[#allocation8 + $0x14c] ss:$16 sps:$4 sm:$0xff]  }
 0x1a9   :  { %3475 = vmatpush1.bf16.msra.mxu1 %v5189_v3  ;;  %v5230_v3 = vld [vmem:[#allocation8 + $0x16c] ss:$16 sps:$4 sm:$0xff]  }
 0x1aa   :  { %2248 = vmatpush1.bf16.msra.mxu0 %v5132_v1  ;;  %3476 = vmatprep.subr.bf16.mxu1 %v5197_v4  ;;  %v5251_v1 = vld [vmem:[#allocation8 + $0x224] ss:$16 sps:$4 sm:$0xff]   ;;  %v5249_v4 = vld [vmem:[#allocation8 + $0x220] ss:$16 sps:$4 sm:$0xff]  }
 0x1ab   :  { %2249 = vmatprep.subr.bf16.mxu0 %v5140_v2  ;;  %v5225_v2 = vld [vmem:[#allocation8 + $0x148] ss:$16 sps:$4 sm:$0xff]  }
 0x1ad   :  { %3477 = vmatpush1.bf16.msra.mxu1 %v5195_v9  ;;  %v5233_v9 = vld [vmem:[#allocation8 + $0x18c] ss:$16 sps:$4 sm:$0xff]  }
 0x1ae   :  { %2250 = vmatpush1.bf16.msra.mxu0 %v5138_v5  ;;  %3478 = vmatprep.subr.bf16.mxu1 %v5203_v10  ;;  %v5257_v5 = vld [vmem:[#allocation8 + $0x244] ss:$16 sps:$4 sm:$0xff]   ;;  %v5255_v10 = vld [vmem:[#allocation8 + $0x240] ss:$16 sps:$4 sm:$0xff]  }
 0x1af   :  { %2251 = vmatprep.subr.bf16.mxu0 %v5146_v8  ;;  %v5228_v8 = vld [vmem:[#allocation8 + $0x168] ss:$16 sps:$4 sm:$0xff]  }
 0x1b1   :  { %3479 = vmatpush1.bf16.msra.mxu1 %v5201_v12  ;;  %v5231_v12 = vld [vmem:[#allocation8 + $0x188] ss:$16 sps:$4 sm:$0xff]  }
 0x1b2   :  { %2252 = vmatpush1.bf16.msra.mxu0 %v5144_v11  ;;  %3480 = vmatprep.subr.bf16.mxu1 %v5209_v15  ;;  %v5263_v11 = vld [vmem:[#allocation8 + $0x264] ss:$16 sps:$4 sm:$0xff]   ;;  %v5261_v15 = vld [vmem:[#allocation8 + $0x260] ss:$16 sps:$4 sm:$0xff]  }
 0x1b3   :  { %2253 = vmatprep.subr.bf16.mxu0 %v5152_v13  ;;  %v5236_v13 = vld [vmem:[#allocation8 + $0x1ac] ss:$16 sps:$4 sm:$0xff]  }
 0x1b5   :  { %3481 = vmatpush1.bf16.msra.mxu1 %v5207_v17  ;;  %v5234_v17 = vld [vmem:[#allocation8 + $0x1a8] ss:$16 sps:$4 sm:$0xff]  }
 0x1b6   :  { %2254 = vmatpush1.bf16.msra.mxu0 %v5150_v16  ;;  %3482 = vmatprep.subr.bf16.mxu1 %v5215_v19  ;;  %v5269_v16 = vld [vmem:[#allocation8 + $0x284] ss:$16 sps:$4 sm:$0xff]   ;;  %v5267_v19 = vld [vmem:[#allocation8 + $0x280] ss:$16 sps:$4 sm:$0xff]  }
 0x1b7   :  { %2255 = vmatprep.subr.bf16.mxu0 %v5158_v18  ;;  %v5239_v18 = vld [vmem:[#allocation8 + $0x1cc] ss:$16 sps:$4 sm:$0xff]  }
 0x1b9   :  { %3483 = vmatpush1.bf16.msra.mxu1 %v5213_v21  ;;  %v5237_v21 = vld [vmem:[#allocation8 + $0x1c8] ss:$16 sps:$4 sm:$0xff]  }
 0x1ba   :  { %2256 = vmatpush1.bf16.msra.mxu0 %v5156_v20  ;;  %3484 = vmatprep.subr.bf16.mxu1 %v5221_v23  ;;  %v5275_v20 = vld [vmem:[#allocation8 + $0x2a4] ss:$16 sps:$4 sm:$0xff]   ;;  %v5273_v23 = vld [vmem:[#allocation8 + $0x2a0] ss:$16 sps:$4 sm:$0xff]  }
 0x1bb   :  { %2257 = vmatprep.subr.bf16.mxu0 %v5164_v22  ;;  %v5242_v22 = vld [vmem:[#allocation8 + $0x1ec] ss:$16 sps:$4 sm:$0xff]  }
 0x1bd   :  { %3485 = vmatpush1.bf16.msra.mxu1 %v5219_v25  ;;  %v5240_v25 = vld [vmem:[#allocation8 + $0x1e8] ss:$16 sps:$4 sm:$0xff]  }
 0x1be   :  { %2258 = vmatpush1.bf16.msra.mxu0 %v5162_v24  ;;  %3495 = vmatprep.subr.bf16.mxu1 %v5245_v27  ;;  %v5281_v24 = vld [vmem:[#allocation8 + $0x2c4] ss:$16 sps:$4 sm:$0xff]   ;;  %v5279_v27 = vld [vmem:[#allocation8 + $0x2c0] ss:$16 sps:$4 sm:$0xff]  }
 0x1bf   :  { %3577 = vmatprep.subr.bf16.mxu0 %v5170_v26  ;;  %v5248_v26 = vld [vmem:[#allocation8 + $0x20c] ss:$16 sps:$4 sm:$0xff]  }
 0x1c1   :  { %2260 = vmatmul.mubr.bf16.vlgmr.msra.gmra.mrb[4].mxu0 %v5829_v14  ;;  %v414_v14 = vsub.s32 1, %v5848_v32 }
 0x1c2   :  { %3578 = vmatpush1.bf16.msra.mxu0 %v5168_v28  ;;  %v5287_v28 = vld [vmem:[#allocation8 + $0x2e4] ss:$16 sps:$4 sm:$0xff]  }
 0x1c3   :  { %3579 = vmatprep.subr.bf16.mxu0 %v5176_v29  ;;  %v415_v39 = vrot.slane %v5851_v51, %v414_v14  ;;  %v5246_v29 = vld [vmem:[#allocation8 + $0x208] ss:$16 sps:$4 sm:$0xff]  }
 0x1c5   :  { %v1936_v45 = vadd.f32 %v5844_v44, %v415_v39  ;;  %v5224_v44 = vld [vmem:[#allocation8 + $0x12c] ss:$16 sps:$4 sm:$0xff]   ;;  %v5297_v39 = vld [vmem:[#allocation8 + $0x320] ss:$16 sps:$4 sm:$0xff]  }
 0x1c6   :  { %3580 = vmatpush1.bf16.msra.mxu0 %v5174_v30  ;;  %v5254_v30 = vld [vmem:[#allocation8 + $0x22c] ss:$16 sps:$4 sm:$0xff]  }
 0x1c7   :  { %3581 = vmatprep.subr.bf16.mxu0 %v5182_v31  ;;  %v5285_v31 = vld [vmem:[#allocation8 + $0x2e0] ss:$16 sps:$4 sm:$0xff]  }
 0x1ca   :  { %3582 = vmatpush1.bf16.msra.mxu0 %v5180_v47  ;;  %v5293_v47 = vld [vmem:[#allocation8 + $0x304] ss:$16 sps:$4 sm:$0xff]  }
 0x1cb   :  { %3583 = vmatprep.subr.bf16.mxu0 %v5188_v7  ;;  %v5252_v7 = vld [vmem:[#allocation8 + $0x228] ss:$16 sps:$4 sm:$0xff]  }
 0x1ce   :  { %3584 = vmatpush1.bf16.msra.mxu0 %v5186_v33  ;;  %v5260_v33 = vld [vmem:[#allocation8 + $0x24c] ss:$16 sps:$4 sm:$0xff]  }
 0x1cf   :  { %3585 = vmatprep.subr.bf16.mxu0 %v5194_v36  ;;  %v5291_v36 = vld [vmem:[#allocation8 + $0x300] ss:$16 sps:$4 sm:$0xff]  }
 0x1d2   :  { %3586 = vmatpush1.bf16.msra.mxu0 %v5192_v37  ;;  %v5299_v37 = vld [vmem:[#allocation8 + $0x324] ss:$16 sps:$4 sm:$0xff]  }
 0x1d3   :  { %3587 = vmatprep.subr.bf16.mxu0 %v5200_v38  ;;  %v5266_v38 = vld [vmem:[#allocation8 + $0x26c] ss:$16 sps:$4 sm:$0xff]  }
 0x1d4   :  { %v2015_v46 = vpop.f32.mrb[0].mxu0 }
 0x1d5   :  { %v4648_v48 = vadd.f32 %v2015_v46, %v1934_v41  ;;  %v2017_v49 = vpop.f32.mrb[1].mxu0  ;;  %v5264_v41 = vld [vmem:[#allocation8 + $0x268] ss:$16 sps:$4 sm:$0xff]   ;;  %v5311_v46 = vld [vmem:[#allocation8 + $0x364] ss:$16 sps:$4 sm:$0xff]  }
 0x1d6   :  { %v4650_v50 = vadd.f32 %v2017_v49, %v1936_v45  ;;  %v2019_v52 = vpop.f32.mrb[2].mxu0  ;;  %3588 = vmatpush1.bf16.msra.mxu0 %v5198_v40  ;;  %v5305_v40 = vld [vmem:[#allocation8 + $0x344] ss:$16 sps:$4 sm:$0xff]   ;;  %v5303_v45 = vld [vmem:[#allocation8 + $0x340] ss:$16 sps:$4 sm:$0xff]  }
 0x1d7   :  { %5467 = vtanh.f32 %v4648_v48  ;;  %v2020_v54 = vpop.f32.mrb[3].mxu0  ;;  %3589 = vmatprep.subr.bf16.mxu0 %v5206_v42  ;;  %v5272_v42 = vld [vmem:[#allocation8 + $0x28c] ss:$16 sps:$4 sm:$0xff]   ;;  %v5270_v48 = vld [vmem:[#allocation8 + $0x288] ss:$16 sps:$4 sm:$0xff]  }
 0x1d8   :  { %5469 = vtanh.f32 %v4650_v50  ;;  %v5278_v49 = vld [vmem:[#allocation8 + $0x2ac] ss:$16 sps:$4 sm:$0xff]   ;;  %v5309_v50 = vld [vmem:[#allocation8 + $0x360] ss:$16 sps:$4 sm:$0xff]   ;;  %v5317_v52 = vld [vmem:[#allocation8 + $0x384] ss:$16 sps:$4 sm:$0xff]  }
 0x1d9   :  { %v5284_v54 = vld [vmem:[#allocation8 + $0x2cc] ss:$16 sps:$4 sm:$0xff]  }
 0x1da   :  { %3590 = vmatpush1.bf16.msra.mxu0 %v5204_v53  ;;  %v5276_v53 = vld [vmem:[#allocation8 + $0x2a8] ss:$16 sps:$4 sm:$0xff]  }
 0x1db   :  { %3591 = vmatprep.subr.bf16.mxu0 %v5212_v55  ;;  %v5315_v55 = vld [vmem:[#allocation8 + $0x380] ss:$16 sps:$4 sm:$0xff]  }
 0x1de   :  { %3592 = vmatpush1.bf16.msra.mxu0 %v5210_v56  ;;  %v5323_v56 = vld [vmem:[#allocation8 + $0x3a4] ss:$16 sps:$4 sm:$0xff]  }
 0x1df   :  { %3593 = vmatprep.subr.bf16.mxu0 %v5218_v43  ;;  %v5282_v43 = vld [vmem:[#allocation8 + $0x2c8] ss:$16 sps:$4 sm:$0xff]  }
 0x1e1   :  { %v5468_v58 = vpop.eup %5467 }
 0x1e2   :  { %v5470_v59 = vpop.eup %5469  ;;  %3594 = vmatpush1.bf16.msra.mxu0 %v5216_v57  ;;  %v2274_v0 = vpack.c.bf16 %v5468_v58, %v5468_v58  ;;  %v5290_v57 = vld [vmem:[#allocation8 + $0x2ec] ss:$16 sps:$4 sm:$0xff]   ;;  %v5329_v58 = vld [vmem:[#allocation8 + $0x3c4] ss:$16 sps:$4 sm:$0xff]  }
 0x1e3   :  { %v2275_v61 = vpack.c.bf16 %v5470_v59, %v5470_v59  ;;  %3595 = vmatprep.subr.bf16.mxu0 %v5224_v44  ;;  %v5321_v44 = vld [vmem:[#allocation8 + $0x3a0] ss:$16 sps:$4 sm:$0xff]   ;;  %v5288_v59 = vld [vmem:[#allocation8 + $0x2e8] ss:$16 sps:$4 sm:$0xff]  }
 0x1e5   :  { %3486 = vmatprep.mubr.bf16.mxu1 %v2275_v61  ;;  %3609 = vmatprep.mubr.bf16.mxu0 %v2275_v61  ;;  %v5327_v61 = vld [vmem:[#allocation8 + $0x3c0] ss:$16 sps:$4 sm:$0xff]  }
 0x1e6   :  { %3487 = vmatmul.mubr.bf16.vlgmr.msra.gmra.mrb[8].mxu1 %v2274_v0  ;;  %3596 = vmatpush1.bf16.msra.mxu0 %v5222_v60  ;;  %v5296_v60 = vld [vmem:[#allocation8 + $0x30c] ss:$16 sps:$4 sm:$0xff]  }
 0x1e7   :  { %3597 = vmatprep.subr.bf16.mxu0 %v5227_v62  ;;  %3496 = vmatpush1.bf16.msra.mxu1 %v5243_v63  ;;  %v5335_v62 = vld [vmem:[#allocation8 + $0x3e4] ss:$16 sps:$4 sm:$0xff]   ;;  %v5294_v63 = vld [vmem:[#allocation8 + $0x308] ss:$16 sps:$4 sm:$0xff]  }
 0x1e8   :  { %3497 = vmatprep.subr.bf16.mxu1 %v5251_v1  ;;  %v5333_v1 = vld [vmem:[#allocation8 + $0x3e0] ss:$16 sps:$4 sm:$0xff]  }
 0x1ea   :  { %3598 = vmatpush1.bf16.msra.mxu0 %v5225_v2  ;;  %v5341_v2 = vld [vmem:[#allocation8 + $0x404] ss:$16 sps:$4 sm:$0xff]  }
 0x1eb   :  { %3599 = vmatprep.subr.bf16.mxu0 %v5230_v3  ;;  %3498 = vmatpush1.bf16.msra.mxu1 %v5249_v4  ;;  %v5300_v3 = vld [vmem:[#allocation8 + $0x328] ss:$16 sps:$4 sm:$0xff]   ;;  %v5308_v4 = vld [vmem:[#allocation8 + $0x34c] ss:$16 sps:$4 sm:$0xff]  }
 0x1ec   :  { %3499 = vmatprep.subr.bf16.mxu1 %v5257_v5  ;;  %v5306_v5 = vld [vmem:[#allocation8 + $0x348] ss:$16 sps:$4 sm:$0xff]  }
 0x1ee   :  { %3600 = vmatpush1.bf16.msra.mxu0 %v5228_v8  ;;  %v5314_v8 = vld [vmem:[#allocation8 + $0x36c] ss:$16 sps:$4 sm:$0xff]  }
 0x1ef   :  { %3601 = vmatprep.subr.bf16.mxu0 %v5233_v9  ;;  %3500 = vmatpush1.bf16.msra.mxu1 %v5255_v10  ;;  %v5312_v9 = vld [vmem:[#allocation8 + $0x368] ss:$16 sps:$4 sm:$0xff]   ;;  %v5320_v10 = vld [vmem:[#allocation8 + $0x38c] ss:$16 sps:$4 sm:$0xff]  }
 0x1f0   :  { %3501 = vmatprep.subr.bf16.mxu1 %v5263_v11  ;;  %v5318_v11 = vld [vmem:[#allocation8 + $0x388] ss:$16 sps:$4 sm:$0xff]  }
 0x1f2   :  { %3602 = vmatpush1.bf16.msra.mxu0 %v5231_v12  ;;  %v5326_v12 = vld [vmem:[#allocation8 + $0x3ac] ss:$16 sps:$4 sm:$0xff]  }
 0x1f3   :  { %3603 = vmatprep.subr.bf16.mxu0 %v5236_v13  ;;  %3502 = vmatpush1.bf16.msra.mxu1 %v5261_v15  ;;  %v5324_v13 = vld [vmem:[#allocation8 + $0x3a8] ss:$16 sps:$4 sm:$0xff]   ;;  %v5332_v15 = vld [vmem:[#allocation8 + $0x3cc] ss:$16 sps:$4 sm:$0xff]  }
 0x1f4   :  { %3503 = vmatprep.subr.bf16.mxu1 %v5269_v16  ;;  %v5330_v16 = vld [vmem:[#allocation8 + $0x3c8] ss:$16 sps:$4 sm:$0xff]  }
 0x1f6   :  { %3604 = vmatpush1.bf16.msra.mxu0 %v5234_v17  ;;  %v5338_v17 = vld [vmem:[#allocation8 + $0x3ec] ss:$16 sps:$4 sm:$0xff]  }
 0x1f7   :  { %3605 = vmatprep.subr.bf16.mxu0 %v5239_v18  ;;  %3504 = vmatpush1.bf16.msra.mxu1 %v5267_v19  ;;  %v5336_v18 = vld [vmem:[#allocation8 + $0x3e8] ss:$16 sps:$4 sm:$0xff]   ;;  %v5344_v19 = vld [vmem:[#allocation8 + $0x40c] ss:$16 sps:$4 sm:$0xff]  }
 0x1f8   :  { %3505 = vmatprep.subr.bf16.mxu1 %v5275_v20  ;;  %v418_v20 = vsub.s32 2, %v5848_v32 }
 0x1fa   :  { %3606 = vmatpush1.bf16.msra.mxu0 %v5237_v21  ;;  %v422_v21 = vsub.s32 3, %v5848_v32 }
 0x1fb   :  { %3607 = vmatprep.subr.bf16.mxu0 %v5242_v22  ;;  %3506 = vmatpush1.bf16.msra.mxu1 %v5273_v23  ;;  %v419_v22 = vrot.slane %v5851_v51, %v418_v20 }
 0x1fc   :  { %3507 = vmatprep.subr.bf16.mxu1 %v5281_v24  ;;  %v423_v23 = vrot.slane %v5851_v51, %v422_v21 }
 0x1fe   :  { %3608 = vmatpush1.bf16.msra.mxu0 %v5240_v25 }
 0x1ff   :  { %3618 = vmatprep.subr.bf16.mxu0 %v5248_v26  ;;  %3508 = vmatpush1.bf16.msra.mxu1 %v5279_v27 }
 0x200   :  { %3509 = vmatprep.subr.bf16.mxu1 %v5287_v28 }
 0x201   :  { %3610 = vmatmul.mubr.bf16.vlgmr.msra.gmra.mrb[8].mxu0 %v2274_v0  ;;  %v5302_v0 = vld [vmem:[#allocation8 + $0x32c] ss:$16 sps:$4 sm:$0xff]  }
 0x202   :  { %3619 = vmatpush1.bf16.msra.mxu0 %v5246_v29 }
 0x203   :  { %3620 = vmatprep.subr.bf16.mxu0 %v5254_v30  ;;  %3510 = vmatpush1.bf16.msra.mxu1 %v5285_v31 }
 0x204   :  { %3511 = vmatprep.subr.bf16.mxu1 %v5293_v47 }
 0x206   :  { %3621 = vmatpush1.bf16.msra.mxu0 %v5252_v7  ;;  %v5339_v7 = vld [vmem:[#allocation8 + $0x400] ss:$16 sps:$4 sm:$0xff]  }
 0x207   :  { %3622 = vmatprep.subr.bf16.mxu0 %v5260_v33  ;;  %3512 = vmatpush1.bf16.msra.mxu1 %v5291_v36  ;;  %v5342_v33 = vld [vmem:[#allocation8 + $0x408] ss:$16 sps:$4 sm:$0xff]  }
 0x208   :  { %3513 = vmatprep.subr.bf16.mxu1 %v5299_v37  ;;  %v5347_v37 = vld [vmem:[#allocation8 + $0x424] ss:$16 sps:$4 sm:$0xff]  }
 0x20a   :  { %3623 = vmatpush1.bf16.msra.mxu0 %v5258_v34  ;;  %v5350_v34 = vld [vmem:[#allocation8 + $0x42c] ss:$16 sps:$4 sm:$0xff]  }
 0x20b   :  { %3624 = vmatprep.subr.bf16.mxu0 %v5266_v38  ;;  %3514 = vmatpush1.bf16.msra.mxu1 %v5297_v39  ;;  %v5345_v38 = vld [vmem:[#allocation8 + $0x420] ss:$16 sps:$4 sm:$0xff]   ;;  %v5348_v39 = vld [vmem:[#allocation8 + $0x428] ss:$16 sps:$4 sm:$0xff]  }
 0x20c   :  { %3515 = vmatprep.subr.bf16.mxu1 %v5305_v40  ;;  %v5353_v40 = vld [vmem:[#allocation8 + $0x444] ss:$16 sps:$4 sm:$0xff]  }
 0x20e   :  { %3625 = vmatpush1.bf16.msra.mxu0 %v5264_v41  ;;  %v5356_v41 = vld [vmem:[#allocation8 + $0x44c] ss:$16 sps:$4 sm:$0xff]  }
 0x20f   :  { %3626 = vmatprep.subr.bf16.mxu0 %v5272_v42  ;;  %3516 = vmatpush1.bf16.msra.mxu1 %v5303_v45  ;;  %v5351_v42 = vld [vmem:[#allocation8 + $0x440] ss:$16 sps:$4 sm:$0xff]   ;;  %v5354_v45 = vld [vmem:[#allocation8 + $0x448] ss:$16 sps:$4 sm:$0xff]  }
 0x210   :  { %3517 = vmatprep.subr.bf16.mxu1 %v5311_v46  ;;  %v5359_v46 = vld [vmem:[#allocation8 + $0x464] ss:$16 sps:$4 sm:$0xff]  }
 0x212   :  { %3627 = vmatpush1.bf16.msra.mxu0 %v5270_v48  ;;  %v5362_v48 = vld [vmem:[#allocation8 + $0x46c] ss:$16 sps:$4 sm:$0xff]  }
 0x213   :  { %3628 = vmatprep.subr.bf16.mxu0 %v5278_v49  ;;  %3518 = vmatpush1.bf16.msra.mxu1 %v5309_v50  ;;  %v5357_v49 = vld [vmem:[#allocation8 + $0x460] ss:$16 sps:$4 sm:$0xff]   ;;  %v5360_v50 = vld [vmem:[#allocation8 + $0x468] ss:$16 sps:$4 sm:$0xff]  }
 0x214   :  { %3519 = vmatprep.subr.bf16.mxu1 %v5317_v52  ;;  %v5365_v52 = vld [vmem:[#allocation8 + $0x484] ss:$16 sps:$4 sm:$0xff]  }
 0x216   :  { %3629 = vmatpush1.bf16.msra.mxu0 %v5276_v53  ;;  %v5368_v53 = vld [vmem:[#allocation8 + $0x48c] ss:$16 sps:$4 sm:$0xff]  }
 0x217   :  { %3630 = vmatprep.subr.bf16.mxu0 %v5284_v54  ;;  %3520 = vmatpush1.bf16.msra.mxu1 %v5315_v55  ;;  %v5363_v54 = vld [vmem:[#allocation8 + $0x480] ss:$16 sps:$4 sm:$0xff]   ;;  %v5366_v55 = vld [vmem:[#allocation8 + $0x488] ss:$16 sps:$4 sm:$0xff]  }
 0x218   :  { %3521 = vmatprep.subr.bf16.mxu1 %v5323_v56  ;;  %v5371_v56 = vld [vmem:[#allocation8 + $0x4a4] ss:$16 sps:$4 sm:$0xff]  }
 0x21a   :  { %3631 = vmatpush1.bf16.msra.mxu0 %v5282_v43  ;;  %v5374_v43 = vld [vmem:[#allocation8 + $0x4ac] ss:$16 sps:$4 sm:$0xff]  }
 0x21b   :  { %3632 = vmatprep.subr.bf16.mxu0 %v5290_v57  ;;  %3522 = vmatpush1.bf16.msra.mxu1 %v5321_v44  ;;  %v5369_v57 = vld [vmem:[#allocation8 + $0x4a0] ss:$16 sps:$4 sm:$0xff]   ;;  %v5372_v44 = vld [vmem:[#allocation8 + $0x4a8] ss:$16 sps:$4 sm:$0xff]  }
 0x21c   :  { %3523 = vmatprep.subr.bf16.mxu1 %v5329_v58  ;;  %v5377_v58 = vld [vmem:[#allocation8 + $0x4c4] ss:$16 sps:$4 sm:$0xff]  }
 0x21e   :  { %3633 = vmatpush1.bf16.msra.mxu0 %v5288_v59  ;;  %v5380_v59 = vld [vmem:[#allocation8 + $0x4cc] ss:$16 sps:$4 sm:$0xff]  }
 0x21f   :  { %3634 = vmatprep.subr.bf16.mxu0 %v5296_v60  ;;  %3524 = vmatpush1.bf16.msra.mxu1 %v5327_v61  ;;  %v5375_v60 = vld [vmem:[#allocation8 + $0x4c0] ss:$16 sps:$4 sm:$0xff]   ;;  %v5378_v61 = vld [vmem:[#allocation8 + $0x4c8] ss:$16 sps:$4 sm:$0xff]  }
 0x220   :  { %3525 = vmatprep.subr.bf16.mxu1 %v5335_v62  ;;  %v5383_v62 = vld [vmem:[#allocation8 + $0x4e4] ss:$16 sps:$4 sm:$0xff]  }
 0x222   :  { %3635 = vmatpush1.bf16.msra.mxu0 %v5294_v63  ;;  %v5386_v63 = vld [vmem:[#allocation8 + $0x4ec] ss:$16 sps:$4 sm:$0xff]  }
 0x223   :  { %3636 = vmatprep.subr.bf16.mxu0 %v5302_v0  ;;  %3526 = vmatpush1.bf16.msra.mxu1 %v5333_v1  ;;  %v5381_v0 = vld [vmem:[#allocation8 + $0x4e0] ss:$16 sps:$4 sm:$0xff]   ;;  %v5384_v1 = vld [vmem:[#allocation8 + $0x4e8] ss:$16 sps:$4 sm:$0xff]  }
 0x224   :  { %3536 = vmatprep.subr.bf16.mxu1 %v5341_v2  ;;  %v5389_v2 = vld [vmem:[#allocation8 + $0x504] ss:$16 sps:$4 sm:$0xff]  }
 0x226   :  { %3637 = vmatpush1.bf16.msra.mxu0 %v5300_v3  ;;  %v5392_v3 = vld [vmem:[#allocation8 + $0x50c] ss:$16 sps:$4 sm:$0xff]  }
 0x227   :  { %3638 = vmatprep.subr.bf16.mxu0 %v5308_v4  ;;  %v5387_v4 = vld [vmem:[#allocation8 + $0x500] ss:$16 sps:$4 sm:$0xff]  }
 0x22a   :  { %3639 = vmatpush1.bf16.msra.mxu0 %v5306_v5  ;;  %v5390_v5 = vld [vmem:[#allocation8 + $0x508] ss:$16 sps:$4 sm:$0xff]  }
 0x22b   :  { %3640 = vmatprep.subr.bf16.mxu0 %v5314_v8  ;;  %v5395_v8 = vld [vmem:[#allocation8 + $0x524] ss:$16 sps:$4 sm:$0xff]  }
 0x22e   :  { %3641 = vmatpush1.bf16.msra.mxu0 %v5312_v9  ;;  %v5398_v9 = vld [vmem:[#allocation8 + $0x52c] ss:$16 sps:$4 sm:$0xff]  }
 0x22f   :  { %3642 = vmatprep.subr.bf16.mxu0 %v5320_v10  ;;  %v5393_v10 = vld [vmem:[#allocation8 + $0x520] ss:$16 sps:$4 sm:$0xff]  }
 0x232   :  { %3643 = vmatpush1.bf16.msra.mxu0 %v5318_v11  ;;  %v5396_v11 = vld [vmem:[#allocation8 + $0x528] ss:$16 sps:$4 sm:$0xff]  }
 0x233   :  { %3644 = vmatprep.subr.bf16.mxu0 %v5326_v12  ;;  %v5401_v12 = vld [vmem:[#allocation8 + $0x544] ss:$16 sps:$4 sm:$0xff]  }
 0x236   :  { %3645 = vmatpush1.bf16.msra.mxu0 %v5324_v13  ;;  %v5404_v13 = vld [vmem:[#allocation8 + $0x54c] ss:$16 sps:$4 sm:$0xff]  }
 0x237   :  { %3646 = vmatprep.subr.bf16.mxu0 %v5332_v15  ;;  %v5399_v15 = vld [vmem:[#allocation8 + $0x540] ss:$16 sps:$4 sm:$0xff]  }
 0x23a   :  { %3647 = vmatpush1.bf16.msra.mxu0 %v5330_v16  ;;  %v5402_v16 = vld [vmem:[#allocation8 + $0x548] ss:$16 sps:$4 sm:$0xff]  }
 0x23b   :  { %3648 = vmatprep.subr.bf16.mxu0 %v5338_v17  ;;  %v5407_v17 = vld [vmem:[#allocation8 + $0x564] ss:$16 sps:$4 sm:$0xff]  }
 0x23e   :  { %3649 = vmatpush1.bf16.msra.mxu0 %v5336_v18  ;;  %v5410_v18 = vld [vmem:[#allocation8 + $0x56c] ss:$16 sps:$4 sm:$0xff]  }
 0x23f   :  { %3659 = vmatprep.subr.bf16.mxu0 %v5344_v19  ;;  %v426_v19 = vsub.s32 4, %v5848_v32 }
 0x253   :  { %v2138_v24 = vpop.f32.mrb[4].mxu1 }
 0x254   :  { %v4651_v25 = vadd.f32 %v2138_v24, %v419_v22  ;;  %v2140_v26 = vpop.f32.mrb[5].mxu1  ;;  %v430_v22 = vsub.s32 5, %v5848_v32  ;;  %v5408_v24 = vld [vmem:[#allocation8 + $0x568] ss:$16 sps:$4 sm:$0xff]  }
 0x255   :  { %v4652_v27 = vadd.f32 %v2140_v26, %v423_v23  ;;  %v2142_v28 = vpop.f32.mrb[6].mxu1  ;;  %v5405_v23 = vld [vmem:[#allocation8 + $0x560] ss:$16 sps:$4 sm:$0xff]   ;;  %v5416_v26 = vld [vmem:[#allocation8 + $0x58c] ss:$16 sps:$4 sm:$0xff]  }
 0x256   :  { %5471 = vtanh.f32 %v4651_v25  ;;  %v2143_v29 = vpop.f32.mrb[7].mxu1  ;;  %v5413_v25 = vld [vmem:[#allocation8 + $0x584] ss:$16 sps:$4 sm:$0xff]   ;;  %v431_v28 = vrot.slane %v5851_v51, %v430_v22 }
 0x257   :  { %5473 = vtanh.f32 %v4652_v27  ;;  %v427_v27 = vrot.slane %v5851_v51, %v426_v19  ;;  %v5411_v29 = vld [vmem:[#allocation8 + $0x580] ss:$16 sps:$4 sm:$0xff]   ;;  %v5425_v51 = vld [vmem:[#allocation8 + $0x5c4] ss:$16 sps:$4 sm:$0xff]  }
 0x260   :  { %v5472_v30 = vpop.eup %5471 }
 0x261   :  { %v5474_v31 = vpop.eup %5473  ;;  %v2276_v36 = vpack.c.bf16 %v5472_v30, %v5472_v30  ;;  %v5414_v30 = vld [vmem:[#allocation8 + $0x588] ss:$16 sps:$4 sm:$0xff]  }
 0x262   :  { %v2277_v47 = vpack.c.bf16 %v5474_v31, %v5474_v31 }
 0x264   :  { %3527 = vmatprep.mubr.bf16.mxu1 %v2277_v47  ;;  %3650 = vmatprep.mubr.bf16.mxu0 %v2277_v47  ;;  %v5419_v47 = vld [vmem:[#allocation8 + $0x5a4] ss:$16 sps:$4 sm:$0xff]  }
 0x265   :  { %3528 = vmatmul.mubr.bf16.vlgmr.msra.gmra.mrb[8].mxu1 %v2276_v36  ;;  %3651 = vmatmul.mubr.bf16.vlgmr.msra.gmra.mrb[8].mxu0 %v2276_v36 }
 0x266   :  { %3537 = vmatpush1.bf16.msra.mxu1 %v5339_v7  ;;  %3660 = vmatpush1.bf16.msra.mxu0 %v5342_v33  ;;  %v5422_v7 = vld [vmem:[#allocation8 + $0x5ac] ss:$16 sps:$4 sm:$0xff]  }
 0x267   :  { %3538 = vmatprep.subr.bf16.mxu1 %v5347_v37  ;;  %3661 = vmatprep.subr.bf16.mxu0 %v5350_v34 }
 0x26a   :  { %3539 = vmatpush1.bf16.msra.mxu1 %v5345_v38  ;;  %3662 = vmatpush1.bf16.msra.mxu0 %v5348_v39  ;;  %v5417_v39 = vld [vmem:[#allocation8 + $0x5a0] ss:$16 sps:$4 sm:$0xff]  }
 0x26b   :  { %3540 = vmatprep.subr.bf16.mxu1 %v5353_v40  ;;  %3663 = vmatprep.subr.bf16.mxu0 %v5356_v41  ;;  %v5420_v40 = vld [vmem:[#allocation8 + $0x5a8] ss:$16 sps:$4 sm:$0xff]   ;;  %v5428_v41 = vld [vmem:[#allocation8 + $0x5cc] ss:$16 sps:$4 sm:$0xff]  }
 0x26e   :  { %3541 = vmatpush1.bf16.msra.mxu1 %v5351_v42  ;;  %3664 = vmatpush1.bf16.msra.mxu0 %v5354_v45  ;;  %v5423_v42 = vld [vmem:[#allocation8 + $0x5c0] ss:$16 sps:$4 sm:$0xff]   ;;  %v5426_v45 = vld [vmem:[#allocation8 + $0x5c8] ss:$16 sps:$4 sm:$0xff]  }
 0x26f   :  { %3542 = vmatprep.subr.bf16.mxu1 %v5359_v46  ;;  %3665 = vmatprep.subr.bf16.mxu0 %v5362_v48  ;;  %v5431_v46 = vld [vmem:[#allocation8 + $0x5e4] ss:$16 sps:$4 sm:$0xff]   ;;  %v5434_v48 = vld [vmem:[#allocation8 + $0x5ec] ss:$16 sps:$4 sm:$0xff]  }
 0x272   :  { %3543 = vmatpush1.bf16.msra.mxu1 %v5357_v49  ;;  %3666 = vmatpush1.bf16.msra.mxu0 %v5360_v50  ;;  %v5429_v49 = vld [vmem:[#allocation8 + $0x5e0] ss:$16 sps:$4 sm:$0xff]   ;;  %v5432_v50 = vld [vmem:[#allocation8 + $0x5e8] ss:$16 sps:$4 sm:$0xff]  }
 0x273   :  { %3544 = vmatprep.subr.bf16.mxu1 %v5365_v52  ;;  %3667 = vmatprep.subr.bf16.mxu0 %v5368_v53  ;;  %v5435_v52 = vld [vmem:[#allocation11 + $0x40] sm:$0xff]  }
 0x276   :  { %3545 = vmatpush1.bf16.msra.mxu1 %v5363_v54  ;;  %3668 = vmatpush1.bf16.msra.mxu0 %v5366_v55 }
 0x277   :  { %3546 = vmatprep.subr.bf16.mxu1 %v5371_v56  ;;  %3669 = vmatprep.subr.bf16.mxu0 %v5374_v43  ;;  %v5436_v56 = vld [vmem:[#allocation11] sm:$0xff]  }
 0x27a   :  { %3547 = vmatpush1.bf16.msra.mxu1 %v5369_v57  ;;  %3670 = vmatpush1.bf16.msra.mxu0 %v5372_v44  ;;  %v5437_v57 = vld [vmem:[#allocation11 + $0x48] sm:$0xff]  }
 0x27b   :  { %3548 = vmatprep.subr.bf16.mxu1 %v5377_v58  ;;  %3671 = vmatprep.subr.bf16.mxu0 %v5380_v59  ;;  %v5438_v44 = vld [vmem:[#allocation11 + $0x8] sm:$0xff]   ;;  %v5439_v58 = vld [vmem:[#allocation11 + $0x50] sm:$0xff]  }
 0x27c   :  { %v5440_v59 = vld [vmem:[#allocation11 + $0x10] sm:$0xff]  }
 0x27e   :  { %3549 = vmatpush1.bf16.msra.mxu1 %v5375_v60  ;;  %3672 = vmatpush1.bf16.msra.mxu0 %v5378_v61  ;;  %v5441_v60 = vld [vmem:[#allocation11 + $0x58] sm:$0xff]  }
 0x27f   :  { %3550 = vmatprep.subr.bf16.mxu1 %v5383_v62  ;;  %3673 = vmatprep.subr.bf16.mxu0 %v5386_v63  ;;  %v5442_v61 = vld [vmem:[#allocation11 + $0x18] sm:$0xff]   ;;  %v5443_v62 = vld [vmem:[#allocation11 + $0x60] sm:$0xff]  }
 0x280   :  { %v5444_v63 = vld [vmem:[#allocation11 + $0x20] sm:$0xff]  }
 0x282   :  { %3551 = vmatpush1.bf16.msra.mxu1 %v5381_v0  ;;  %3674 = vmatpush1.bf16.msra.mxu0 %v5384_v1  ;;  %v5445_v0 = vld [vmem:[#allocation11 + $0x68] sm:$0xff]  }
 0x283   :  { %3552 = vmatprep.subr.bf16.mxu1 %v5389_v2  ;;  %3675 = vmatprep.subr.bf16.mxu0 %v5392_v3  ;;  %v5446_v1 = vld [vmem:[#allocation11 + $0x28] sm:$0xff]   ;;  %v5447_v2 = vld [vmem:[#allocation11 + $0x70] sm:$0xff]  }
 0x284   :  { %v5448_v3 = vld [vmem:[#allocation11 + $0x30] sm:$0xff]  }
 0x286   :  { %3553 = vmatpush1.bf16.msra.mxu1 %v5387_v4  ;;  %3676 = vmatpush1.bf16.msra.mxu0 %v5390_v5  ;;  %v5449_v4 = vld [vmem:[#allocation11 + $0x78] sm:$0xff]  }
 0x287   :  { %3554 = vmatprep.subr.bf16.mxu1 %v5395_v8  ;;  %3677 = vmatprep.subr.bf16.mxu0 %v5398_v9  ;;  %v5450_v5 = vld [vmem:[#allocation11 + $0x38] sm:$0xff]   ;;  %v5451_v8 = vld [vmem:[#allocation11 + $0xc0] sm:$0xff]  }
 0x288   :  { %v2472_v9 = vld [vmem:[#allocation10] sm:$0xf] }
 0x28a   :  { %3555 = vmatpush1.bf16.msra.mxu1 %v5393_v10  ;;  %3678 = vmatpush1.bf16.msra.mxu0 %v5396_v11  ;;  %v2477_v10 = vrot.slane %v2472_v9, %v410_v35  ;;  %v2481_v11 = vrot.slane %v2472_v9, %v414_v14 }
 0x28b   :  { %3556 = vmatprep.subr.bf16.mxu1 %v5401_v12  ;;  %3679 = vmatprep.subr.bf16.mxu0 %v5404_v13  ;;  %v2489_v12 = vrot.slane %v2472_v9, %v422_v21  ;;  %v5454_v21 = vld [vmem:[#allocation11 + $0x88] sm:$0xff]  }
 0x28e   :  { %3557 = vmatpush1.bf16.msra.mxu1 %v5399_v15  ;;  %3680 = vmatpush1.bf16.msra.mxu0 %v5402_v16 }
 0x28f   :  { %3558 = vmatprep.subr.bf16.mxu1 %v5407_v17  ;;  %3681 = vmatprep.subr.bf16.mxu0 %v5410_v18 }
 0x292   :  { %3559 = vmatpush1.bf16.msra.mxu1 %v5405_v23  ;;  %3682 = vmatpush1.bf16.msra.mxu0 %v5408_v24 }
 0x293   :  { %3560 = vmatprep.subr.bf16.mxu1 %v5413_v25  ;;  %3683 = vmatprep.subr.bf16.mxu0 %v5416_v26 }
 0x294   :  { %v2261_v31 = vpop.f32.mrb[4].mxu0 }
 0x295   :  { %v4653_v33 = vadd.f32 %v2261_v31, %v427_v27  ;;  %v2263_v36 = vpop.f32.mrb[5].mxu0  ;;  %v5453_v31 = vld [vmem:[#allocation11 + $0xc8] sm:$0xff]  }
 0x296   :  { %v4654_v37 = vadd.f32 %v2263_v36, %v431_v28  ;;  %v2265_v34 = vpop.f32.mrb[6].mxu0  ;;  %3561 = vmatpush1.bf16.msra.mxu1 %v5411_v29  ;;  %3684 = vmatpush1.bf16.msra.mxu0 %v5414_v30  ;;  %v5452_v30 = vld [vmem:[#allocation11 + $0x80] sm:$0xff]   ;;  %v5457_v36 = vld [vmem:[#allocation11 + $0xd8] sm:$0xff]  }
 0x297   :  { %5475 = vtanh.f32 %v4653_v33  ;;  %v2266_v38 = vpop.f32.mrb[7].mxu0  ;;  %3562 = vmatprep.subr.bf16.mxu1 %v5419_v47  ;;  %3685 = vmatprep.subr.bf16.mxu0 %v5422_v7  ;;  %v5455_v7 = vld [vmem:[#allocation11 + $0xd0] sm:$0xff]   ;;  %v5459_v34 = vld [vmem:[#allocation11 + $0xe0] sm:$0xff]  }
 0x298   :  { %5477 = vtanh.f32 %v4654_v37  ;;  %v5456_v33 = vld [vmem:[#allocation11 + $0x90] sm:$0xff]   ;;  %v5458_v37 = vld [vmem:[#allocation11 + $0x98] sm:$0xff]   ;;  %v5460_v38 = vld [vmem:[#allocation11 + $0xa0] sm:$0xff]  }
 0x29a   :  { %3563 = vmatpush1.bf16.msra.mxu1 %v5417_v39  ;;  %3686 = vmatpush1.bf16.msra.mxu0 %v5420_v40  ;;  %v5461_v39 = vld [vmem:[#allocation11 + $0xe8] sm:$0xff]  }
 0x29b   :  { %3564 = vmatprep.subr.bf16.mxu1 %v5425_v51  ;;  %3687 = vmatprep.subr.bf16.mxu0 %v5428_v41  ;;  %v5462_v40 = vld [vmem:[#allocation11 + $0xa8] sm:$0xff]   ;;  %v2485_v51 = vrot.slane %v2472_v9, %v418_v20  ;;  %v5463_v41 = vld [vmem:[#allocation11 + $0xf0] sm:$0xff]   ;;  %v4570_v20 = vld [vmem:[#allocation13] ss:$0 sm:$0xff] }
 0x29e   :  { %3565 = vmatpush1.bf16.msra.mxu1 %v5423_v42  ;;  %3688 = vmatpush1.bf16.msra.mxu0 %v5426_v45  ;;  %v5464_v42 = vld [vmem:[#allocation11 + $0xb0] sm:$0xff]  }
 0x29f   :  { %3566 = vmatprep.subr.bf16.mxu1 %v5431_v46  ;;  %3689 = vmatprep.subr.bf16.mxu0 %v5434_v48  ;;  %v5465_v46 = vld [vmem:[#allocation11 + $0xf8] sm:$0xff]  }
 0x2a0   :  { %v5466_v48 = vld [vmem:[#allocation11 + $0xb8] sm:$0xff]  }
 0x2a1   :  { %v5476_v53 = vpop.eup %5475 }
 0x2a2   :  { %v5478_v54 = vpop.eup %5477  ;;  %3567 = vmatpush1.bf16.msra.mxu1 %v5429_v49  ;;  %3690 = vmatpush1.bf16.msra.mxu0 %v5432_v50  ;;  %v2278_v43 = vpack.c.bf16 %v5476_v53, %v5476_v53 }
 0x2a3   :  { %v2279_v55 = vpack.c.bf16 %v5478_v54, %v5478_v54  ;;  %4603 = vmatprep.subr.bf16.mxu1 %v5435_v52 }
 0x2a5   :  { %3568 = vmatprep.mubr.bf16.mxu1 %v2279_v55  ;;  %3691 = vmatprep.mubr.bf16.mxu0 %v2279_v55 }
 0x2a6   :  { %3569 = vmatmul.mubr.bf16.vlgmr.msra.gmra.mrb[8].mxu1 %v2278_v43  ;;  %3692 = vmatmul.mubr.bf16.vlgmr.msra.gmra.mrb[8].mxu0 %v2278_v43 }
 0x2a7   :  { %4604 = vmatpush3.bf16.msra.mxu1 %v5436_v56  ;;  %v4052_v56 = vand.u32 127, %v408_v6 }
 0x2a8   :  { %4605 = vmatprep.subr.bf16.mxu1 %v5437_v57 }
 0x2a9   :  { %vm4053_vm0 = vcmp.lt.s32.totalorder %v4052_v56, 2 }
 0x2ab   :  { %4606 = vmatpush3.bf16.msra.mxu1 %v5438_v44 }
 0x2ac   :  { %4607 = vmatprep.subr.bf16.mxu1 %v5439_v58 }
 0x2af   :  { %4608 = vmatpush3.bf16.msra.mxu1 %v5440_v59 }
 0x2b0   :  { %4609 = vmatprep.subr.bf16.mxu1 %v5441_v60 }
 0x2b3   :  { %4610 = vmatpush3.bf16.msra.mxu1 %v5442_v61 }
 0x2b4   :  { %4611 = vmatprep.subr.bf16.mxu1 %v5443_v62 }
 0x2b7   :  { %4612 = vmatpush3.bf16.msra.mxu1 %v5444_v63 }
 0x2b8   :  { %4613 = vmatprep.subr.bf16.mxu1 %v5445_v0 }
 0x2bb   :  { %4614 = vmatpush3.bf16.msra.mxu1 %v5446_v1 }
 0x2bc   :  { %4615 = vmatprep.subr.bf16.mxu1 %v5447_v2 }
 0x2bf   :  { %4616 = vmatpush3.bf16.msra.mxu1 %v5448_v3 }
 0x2c0   :  { %4617 = vmatprep.subr.bf16.mxu1 %v5449_v4 }
 0x2c3   :  { %4618 = vmatpush3.bf16.msra.mxu1 %v5450_v5 }
 0x2c4   :  { %4625 = vmatprep.subr.bf16.mxu1 %v5451_v8 }
 0x379   :  { %v3570_v13 = vpop.f32.mrb[8].mxu1  ;;  %v3693_v15 = vpop.f32.mrb[8].mxu0 }
 0x37a   :  { %v4655_v16 = vadd.f32 %v3570_v13, %v2477_v10  ;;  %v3572_v17 = vpop.f32.mrb[9].mxu1  ;;  %v3695_v18 = vpop.f32.mrb[9].mxu0  ;;  %v4657_v45 = vadd.f32 %v3693_v15, %v2485_v51 }
 0x37b   :  { %v4656_v19 = vadd.f32 %v3572_v17, %v2481_v11  ;;  %v4658_v22 = vadd.f32 %v3695_v18, %v2489_v12  ;;  %v3574_v23 = vpop.f32.mrb[10].mxu1  ;;  %v3697_v24 = vpop.f32.mrb[10].mxu0 }
 0x37c   :  { %v3700_v25 = vmax.f32 %v4655_v16, 0.0  ;;  %v3575_v26 = vpop.f32.mrb[11].mxu1  ;;  %v3698_v27 = vpop.f32.mrb[11].mxu0  ;;  %v3702_v49 = vmax.f32 %v4657_v45, 0.0 }
 0x37d   :  { %v3701_v28 = vmax.f32 %v4656_v19, 0.0  ;;  %v3703_v35 = vmax.f32 %v4658_v22, 0.0 }
 0x37e   :  { %v3704_v14 = vpack.c.bf16 %v3700_v25, %v3700_v25  ;;  %v3706_v50 = vpack.c.bf16 %v3702_v49, %v3702_v49 }
 0x37f   :  { %v3705_v29 = vpack.c.bf16 %v3701_v28, %v3701_v28  ;;  %v3707_v47 = vpack.c.bf16 %v3703_v35, %v3703_v35 }
 0x381   :  { %4003 = vmatprep.mubr.bf16.mxu1 %v3705_v29 }
 0x382   :  { %4004 = vmatmul.mubr.bf16.vlgmr.msra.gmra.mrb[12].mxu1 %v3704_v14 }
 0x383   :  { %4626 = vmatpush3.bf16.msra.mxu1 %v5452_v30  ;;  %4043 = vmatprep.mubr.bf16.mxu1 %v3707_v47 }
 0x384   :  { %4627 = vmatprep.subr.bf16.mxu1 %v5453_v31 }
 0x387   :  { %4628 = vmatpush3.bf16.msra.mxu1 %v5454_v21 }
 0x388   :  { %4629 = vmatprep.subr.bf16.mxu1 %v5455_v7 }
 0x38b   :  { %4630 = vmatpush3.bf16.msra.mxu1 %v5456_v33 }
 0x38c   :  { %4631 = vmatprep.subr.bf16.mxu1 %v5457_v36 }
 0x38f   :  { %4632 = vmatpush3.bf16.msra.mxu1 %v5458_v37 }
 0x390   :  { %4633 = vmatprep.subr.bf16.mxu1 %v5459_v34 }
 0x393   :  { %4634 = vmatpush3.bf16.msra.mxu1 %v5460_v38 }
 0x394   :  { %4635 = vmatprep.subr.bf16.mxu1 %v5461_v39 }
 0x397   :  { %4636 = vmatpush3.bf16.msra.mxu1 %v5462_v40 }
 0x398   :  { %4637 = vmatprep.subr.bf16.mxu1 %v5463_v41 }
 0x39b   :  { %4638 = vmatpush3.bf16.msra.mxu1 %v5464_v42 }
 0x39c   :  { %4639 = vmatprep.subr.bf16.mxu1 %v5465_v46 }
 0x39f   :  { %4640 = vmatpush3.bf16.msra.mxu1 %v5466_v48 }
 0x3a2   :  { %4044 = vmatmul.mubr.bf16.vlgmr.msra.gmra.mrb[16].mxu1 %v3706_v50 }
 0x455   :  { %v4619_v52 = vpop.f32.mrb[12].mxu1 }
 0x456   :  { %v4620_v53 = vpop.f32.mrb[13].mxu1 }
 0x457   :  { %v4621_v54 = vadd.f32 %v4620_v53, %v4619_v52  ;;  %v4622_v55 = vpop.f32.mrb[14].mxu1 }
 0x458   :  { %v4623_v32 = vpop.f32.mrb[15].mxu1 }
 0x459   :  { %v4006_v44 = vadd.f32 %v4621_v54, %v4570_v20 }
 0x475   :  { %v4641_v43 = vpop.f32.mrb[16].mxu1 }
 0x476   :  { %v4642_v57 = vpop.f32.mrb[17].mxu1 }
 0x477   :  { %v4643_v58 = vadd.f32 %v4642_v57, %v4641_v43  ;;  %v4644_v59 = vpop.f32.mrb[18].mxu1 }
 0x478   :  { %v4645_v60 = vpop.f32.mrb[19].mxu1 }
 0x479   :  { %v4046_v61 = vadd.f32 %v4643_v58, %v4006_v44 }
 0x47b   :  { %v4054_v62 = vsel %vm4053_vm0, %v4046_v61, -inf }
 0x47c   :  { %4055 = vmax.xlane.f32.xlu0 %v4054_v62 }
 0x509   :  { %v4056_v63 = vpop.xlane.xlu0 %4055 }
 0x50a   :  { %v4057_v0 = vsub.f32 %v4054_v62, %v4056_v63 }
 0x50c   :  { %v4058_v1 = vmul.f32 1.442695, %v4057_v0 }
 0x50e   :  { %5479 = vpow2.f32 %v4058_v1 }
 0x518   :  { %v5480_v2 = vpop.eup %5479 }
 0x519   :  { %4060 = vadd.xlane.f32.xlu0 %v5480_v2 }
 0x5a6   :  { %v4061_v3 = vpop.xlane.xlu0 %4060 }
 0x5a7   :  { %5481 = vlog2.f32 %v4061_v3 }
 0x5b1   :  { %v5482_v4 = vpop.eup %5481 }
 0x5b2   :  { %v4063_v6 = vmul.f32 0.6931472, %v5482_v4 }
 0x5b4   :  { %v4064_v5 = vsub.f32 %v4057_v0, %v4063_v6 }
 0x5b6   :  { %4065 = vst [vmem:[#allocation14] sm:$0xff] %v4064_v5 }
 0x5b7   :  { %5648 = shalt.err (!%p5645_p4)
}
 0x5b8   :  { %s5649_s15 = scalar_lea.hbm %s5902_s7, 128 }
 0x5b9   :  { %p5650_p5 = scmp.ne.s32.totalorder %s5902_s7, %s5649_s15  ;;  %p5653_p6 = scmp.lt.u32.totalorder %s5649_s15, %s5902_s7 }
 0x5bb   :  { %p5655_p7 = pnand %p5653_p6, %p5650_p5 }
 0x5bd   :  { %5658 = shalt.err (!%p5655_p7)
}
 0x5be   :  { %4075 = dma.vmem_to_hbm [thread:$0]  %s4073_s13, 128, %s5902_s7, [#allocation4]  }
 0x5bf   :  { %5667 = dma.done.wait [#allocation4], 128  }
 0x5c0   :  { %5668 = vsyncadd [#allocation4], 4294967168 }
 0x5c1   :  { %4079 = vsyncpa [#allocation3], 1 }
 0x5c2   :  { %4080 = vsyncpa [#allocation6], 1 }
 0x5c3   :  { %4081 = vsyncpa [#allocation9], 1 }
 0x5c4   :  { %4082 = vsyncpa [#allocation12], 1 }
 0x5c5   :  { %4083 = vsyncpa [#allocation4], 1 }

</bundles_post_ra>
